<compile_context>
chip_gen: v7x
topology: tpu7x:2x2x1
jax: 0.10.0
libtpu: 0.0.40
codegen_flags: <defaults>
</compile_context>

<pallas_src>
import functools

import jax
import jax.numpy as jnp
from jax.experimental import pallas as pl
from jax.experimental.pallas import tpu as pltpu

_VMEM_BUDGET = 48 * 1024 * 1024   # conservative: leaves headroom inside v7x's 64 MiB physical VMEM


def _round_up(x, m):
    return (x + m - 1) // m * m


def _pick_tile_m(n, vmem_budget):
    """Largest 128-multiple row tile whose double-buffered bf16 A block fits the budget."""
    n128 = _round_up(max(n, 1), 128)
    tile = min(512, n128)
    while tile > 128 and 2 * tile * n128 * 2 > vmem_budget // 2:
        tile //= 2
    return tile


# ------------------------------------------------------------------ kernels ---
def _conv1_kernel(a_ref, x_ref, w1_ref, b1_ref, w2_ref, hw2_ref):
    """Row tile of: HW2 = tanh(A @ X @ W1 + b1) @ W2."""
    # A row block (bf16) x full X (bf16), f32 accumulation on the MXU.
    ax = jnp.dot(a_ref[...], x_ref[...], preferred_element_type=jnp.float32)      # (T, Fp)
    h = jnp.tanh(
        jnp.dot(ax.astype(jnp.bfloat16), w1_ref[...],
                preferred_element_type=jnp.float32) + b1_ref[...])                 # (T, 128)
    # TODO(synk): torch.nn.Dropout(p=0.3) is eval-mode identity here; the stochastic
    #             training mask is not reproduced.
    hw2_ref[...] = jnp.dot(h.astype(jnp.bfloat16), w2_ref[...],
                           preferred_element_type=jnp.float32)                     # (T, 2)


def _conv2_cls_kernel(a_ref, hw2_ref, b2_ref, wc_ref, bc_ref, out_ref):
    """Row tile of: out = sigmoid( Linear(tanh(A @ HW2 + b2)) )."""
    agg = jnp.dot(a_ref[...], hw2_ref[...].astype(jnp.bfloat16),
                  preferred_element_type=jnp.float32)                              # (T, 2)
    emb = jnp.tanh(agg + b2_ref[...])
    # TODO(synk): second Dropout(p=0.3) is likewise eval-mode identity.
    # Linear(2 -> 1): two VPU FMAs with SMEM scalars (keeps the 2-wide tail off the MXU).
    logits = emb[:, 0:1] * wc_ref[0, 0] + emb[:, 1:2] * wc_ref[1, 0] + bc_ref[0, 0]
    out_ref[...] = jax.nn.sigmoid(logits)                                          # (T, 1)


# --------------------------------------------------------------------- glue ---
def _build_a_hat(n, edge_index):
    """Dense symmetric-normalized adjacency D^-1/2 (A + I) D^-1/2 (pure-JAX glue).

    Duplicate edges accumulate (scatter-add, matching message summation); the edge
    list is assumed not to already contain self-loops (they are added here).
    """
    src, dst = edge_index[0], edge_index[1]
    adj = jnp.zeros((n, n), jnp.float32).at[dst, src].add(1.0)   # messages flow src -> dst
    adj = adj + jnp.eye(n, dtype=jnp.float32)                    # add self-loops
    deg = jnp.sum(adj, axis=1)
    d_inv_sqrt = jnp.where(deg > 0, jax.lax.rsqrt(deg), 0.0)
    return d_inv_sqrt[:, None] * adj * d_inv_sqrt[None, :]


# ------------------------------------------------------------------ wrapper ---
@functools.partial(jax.jit, static_argnames=("tile_m",))
def gcn_forward(x, edge_index, params, tile_m=None):
    """x: (N, 165) float32, edge_index: (2, E) int32. Returns (N, 1) float32."""
    n, f_in = x.shape
    if tile_m is None:
        tile_m = _pick_tile_m(n, _VMEM_BUDGET)
    assert tile_m % 8 == 0

    n_pad = _round_up(max(n, tile_m), tile_m)
    f_pad = _round_up(f_in, 128)                     # 165 -> 256, clean lane layout
    hid = params["w1"].shape[1]                      # 128
    c2 = params["w2"].shape[1]                       # 2

    # Dense normalized adjacency, zero-padded rows/cols, cast to bf16 for HBM traffic.
    a_hat = _build_a_hat(n, edge_index)
    a_pad = jnp.zeros((n_pad, n_pad), jnp.float32).at[:n, :n].set(a_hat).astype(jnp.bfloat16)

    x_pad = jnp.zeros((n_pad, f_pad), jnp.float32).at[:n, :f_in].set(x).astype(jnp.bfloat16)
    w1_pad = (jnp.zeros((f_pad, hid), jnp.float32)
              .at[:f_in, :].set(params["w1"]).astype(jnp.bfloat16))
    b1 = params["b1"].reshape(1, hid).astype(jnp.float32)
    w2 = params["w2"].astype(jnp.bfloat16)
    b2 = params["b2"].reshape(1, c2).astype(jnp.float32)
    wc = params["wc"].reshape(2, 1).astype(jnp.float32)
    bc = params["bc"].reshape(1, 1).astype(jnp.float32)

    grid = (n_pad // tile_m,)
    cparams = pltpu.CompilerParams(
        dimension_semantics=("parallel",),           # independent row tiles (2 TCs on v7x)
        vmem_limit_bytes=_VMEM_BUDGET,
    )

    # ---- phase 1: HW2 = tanh(A @ X @ W1 + b1) @ W2 ---------------------------
    hw2 = pl.pallas_call(
        _conv1_kernel,
        out_shape=jax.ShapeDtypeStruct((n_pad, c2), jnp.float32),
        grid=grid,
        in_specs=[
            pl.BlockSpec((tile_m, n_pad), lambda i: (i, 0)),    # A row block (dominant stream)
            pl.BlockSpec((n_pad, f_pad), lambda i: (0, 0)),     # X  (resident, fetched once)
            pl.BlockSpec((f_pad, hid), lambda i: (0, 0)),       # W1
            pl.BlockSpec((1, hid), lambda i: (0, 0)),           # b1
            pl.BlockSpec((hid, c2), lambda i: (0, 0)),          # W2
        ],
        out_specs=pl.BlockSpec((tile_m, c2), lambda i: (i, 0)),
        compiler_params=cparams,
    )(a_pad, x_pad, w1_pad, b1, w2)

    # ---- phase 2: out = sigmoid( Linear(tanh(A @ HW2 + b2)) ) ----------------
    out_pad = pl.pallas_call(
        _conv2_cls_kernel,
        out_shape=jax.ShapeDtypeStruct((n_pad, 1), jnp.float32),
        grid=grid,
        in_specs=[
            pl.BlockSpec((tile_m, n_pad), lambda i: (i, 0)),    # A row block
            pl.BlockSpec((n_pad, c2), lambda i: (0, 0)),        # HW2 (resident, O(N) bytes)
            pl.BlockSpec((1, c2), lambda i: (0, 0)),            # b2
            pl.BlockSpec(memory_space=pltpu.MemorySpace.SMEM),  # wc (2,1) scalars
            pl.BlockSpec(memory_space=pltpu.MemorySpace.SMEM),  # bc (1,1) scalar
        ],
        out_specs=pl.BlockSpec((tile_m, 1), lambda i: (i, 0)),
        compiler_params=cparams,
    )(a_pad, hw2, b2, wc, bc)

    return out_pad[:n]


# --------------------------------------------------------------- reference ---
def gcn_reference(x, edge_index, params):
    a = _build_a_hat(x.shape[0], edge_index)
    h = jnp.tanh(a @ (x @ params["w1"]) + params["b1"])
    emb = jnp.tanh(a @ (h @ params["w2"]) + params["b2"])
    return jax.nn.sigmoid(emb @ params["wc"] + params["bc"])


# ------------------------------------------------------------------ params ---
def init_params(key):
    ks = jax.random.split(key, 6)

    def glorot(k, fan_in, fan_out):
        limit = jnp.sqrt(6.0 / (fan_in + fan_out))
        return jax.random.uniform(k, (fan_in, fan_out), jnp.float32,
                                  minval=-limit, maxval=limit)

    def bias(k, fan_out):
        return jax.random.uniform(k, (1, fan_out), jnp.float32, minval=-0.1, maxval=0.1)

    return {
        "w1": glorot(ks[0], 165, 128), "b1": bias(ks[1], 128),
        "w2": glorot(ks[2], 128, 2),   "b2": bias(ks[3], 2),
        "wc": glorot(ks[4], 2, 1),     "bc": bias(ks[5], 1),
    }


# -------------------------------------------------------------------- main ---
if __name__ == "__main__":
    key = jax.random.PRNGKey(0)
    k_x, k_p = jax.random.split(key)

    N = 256                                          # small node count (grid = 2 row tiles)
    x = jax.random.normal(k_x, (N, 165), dtype=jnp.float32)

    # deterministic undirected ring graph (both directions of each edge)
    src = jnp.arange(N, dtype=jnp.int32)
    dst = (src + 1) % N
    edge_index = jnp.concatenate(
        [jnp.stack([src, dst]), jnp.stack([dst, src])], axis=1)   # (2, 2N)

    params = init_params(k_p)

    out = gcn_forward(x, edge_index, params, tile_m=128)          # grid = (2,)
    out = jax.block_until_ready(out)

    assert out.shape == (N, 1)
    assert bool(jnp.all((out >= 0.0) & (out <= 1.0)))

    ref = gcn_reference(x, edge_index, params)                    # pure-JAX f32 reference
    max_err = float(jnp.max(jnp.abs(out - ref)))
    assert max_err < 5e-2, f"mismatch vs reference: {max_err}"

    print("KERNEL_OK")
</pallas_src>

<mosaic_0001>
module attributes {stable_mosaic.version = 11 : i64} {
  func.func private @main(%arg0: i32) attributes {dimension_semantics = [#tpu.dimension_semantics<core_parallel>], iteration_bounds = array<i64: 2>, tpu.core_type = #tpu.core_type<sc_scalar_subcore>, window_params = []} {
    return
  }
}

module attributes {stable_mosaic.version = 11 : i64} {
  func.func private @main(%arg0: i32) attributes {dimension_semantics = [#tpu.dimension_semantics<core_parallel>], iteration_bounds = array<i64: 2>, tpu.core_type = #tpu.core_type<sc_scalar_subcore>, window_params = []} {
    return
  }
}

module attributes {stable_mosaic.version = 11 : i64} {
  func.func @_conv1_kernel(%arg0: i32, %arg1: memref<128x256xbf16, #tpu.memory_space<vmem>>, %arg2: memref<256x256xbf16, #tpu.memory_space<vmem>>, %arg3: memref<256x128xbf16, #tpu.memory_space<vmem>>, %arg4: memref<1x128xf32, #tpu.memory_space<vmem>>, %arg5: memref<128x2xbf16, #tpu.memory_space<vmem>>, %arg6: memref<128x2xf32, #tpu.memory_space<vmem>>) attributes {dimension_semantics = [#tpu.dimension_semantics<parallel>], iteration_bounds = array<i64: 2>, scalar_prefetch = 0 : i64, scratch_operands = 0 : i64, tpu.core_type = #tpu.core_type<tc>, window_params = [{transform_indices = @transform_0, window_bounds = array<i64: 128, 256>}, {pipeline_mode = #tpu.pipeline_mode<synchronous>, transform_indices = @transform_1, window_bounds = array<i64: 256, 256>}, {pipeline_mode = #tpu.pipeline_mode<synchronous>, transform_indices = @transform_2, window_bounds = array<i64: 256, 128>}, {pipeline_mode = #tpu.pipeline_mode<synchronous>, transform_indices = @transform_3, window_bounds = array<i64: 1, 128>}, {pipeline_mode = #tpu.pipeline_mode<synchronous>, transform_indices = @transform_4, window_bounds = array<i64: 128, 2>}, {transform_indices = @transform_5, window_bounds = array<i64: 128, 2>}]} {
    %c0 = arith.constant 0 : index
    %c0_0 = arith.constant 0 : index
    %0 = vector.load %arg1[%c0, %c0_0] : memref<128x256xbf16, #tpu.memory_space<vmem>>, vector<128x256xbf16>
    %c0_1 = arith.constant 0 : index
    %c0_2 = arith.constant 0 : index
    %1 = vector.load %arg2[%c0_1, %c0_2] : memref<256x256xbf16, #tpu.memory_space<vmem>>, vector<256x256xbf16>
    %cst = arith.constant dense<0.000000e+00> : vector<128x256xf32>
    %2 = tpu.matmul %0, %1, %cst {dimension_numbers = #tpu.dot_dimension_numbers<[1], [0], [0], [1], [0, 0, 1, 1], [], []>} : vector<128x256xbf16>, vector<256x256xbf16>, vector<128x256xf32> -> vector<128x256xf32>
    %3 = arith.truncf %2 : vector<128x256xf32> to vector<128x256xbf16>
    %c0_3 = arith.constant 0 : index
    %c0_4 = arith.constant 0 : index
    %4 = vector.load %arg3[%c0_3, %c0_4] : memref<256x128xbf16, #tpu.memory_space<vmem>>, vector<256x128xbf16>
    %cst_5 = arith.constant dense<0.000000e+00> : vector<128x128xf32>
    %5 = tpu.matmul %3, %4, %cst_5 {dimension_numbers = #tpu.dot_dimension_numbers<[1], [0], [0], [1], [0, 0, 1, 1], [], []>} : vector<128x256xbf16>, vector<256x128xbf16>, vector<128x128xf32> -> vector<128x128xf32>
    %c0_6 = arith.constant 0 : index
    %c0_7 = arith.constant 0 : index
    %6 = vector.load %arg4[%c0_6, %c0_7] : memref<1x128xf32, #tpu.memory_space<vmem>>, vector<1x128xf32>
    %7 = vector.broadcast %6 : vector<1x128xf32> to vector<128x128xf32>
    %8 = arith.addf %5, %7 : vector<128x128xf32>
    %9 = math.tanh %8 : vector<128x128xf32>
    %10 = arith.truncf %9 : vector<128x128xf32> to vector<128x128xbf16>
    %c0_8 = arith.constant 0 : index
    %c0_9 = arith.constant 0 : index
    %11 = vector.load %arg5[%c0_8, %c0_9] : memref<128x2xbf16, #tpu.memory_space<vmem>>, vector<128x2xbf16>
    %cst_10 = arith.constant dense<0.000000e+00> : vector<128x2xf32>
    %12 = tpu.matmul %10, %11, %cst_10 {dimension_numbers = #tpu.dot_dimension_numbers<[1], [0], [0], [1], [0, 0, 1, 1], [], []>} : vector<128x128xbf16>, vector<128x2xbf16>, vector<128x2xf32> -> vector<128x2xf32>
    %c0_11 = arith.constant 0 : index
    %c0_12 = arith.constant 0 : index
    %13 = vector.load %arg6[%c0_11, %c0_12] : memref<128x2xf32, #tpu.memory_space<vmem>>, vector<128x2xf32>
    tpu.vector_store %arg6[%c0_11, %c0_12], %12 {strides = array<i32>} : memref<128x2xf32, #tpu.memory_space<vmem>>, vector<128x2xf32>,
    return
  }
  func.func @transform_0(%arg0: i32) -> (i32, i32) {
    %c0_i32 = arith.constant 0 : i32
    %c0_i32_0 = arith.constant 0 : i32
    return %arg0, %c0_i32 : i32, i32
  }
  func.func @transform_1(%arg0: i32) -> (i32, i32) {
    %c0_i32 = arith.constant 0 : i32
    %c0_i32_0 = arith.constant 0 : i32
    %c0_i32_1 = arith.constant 0 : i32
    return %c0_i32, %c0_i32_0 : i32, i32
  }
  func.func @transform_2(%arg0: i32) -> (i32, i32) {
    %c0_i32 = arith.constant 0 : i32
    %c0_i32_0 = arith.constant 0 : i32
    %c0_i32_1 = arith.constant 0 : i32
    return %c0_i32, %c0_i32_0 : i32, i32
  }
  func.func @transform_3(%arg0: i32) -> (i32, i32) {
    %c0_i32 = arith.constant 0 : i32
    %c0_i32_0 = arith.constant 0 : i32
    %c0_i32_1 = arith.constant 0 : i32
    return %c0_i32, %c0_i32_0 : i32, i32
  }
  func.func @transform_4(%arg0: i32) -> (i32, i32) {
    %c0_i32 = arith.constant 0 : i32
    %c0_i32_0 = arith.constant 0 : i32
    %c0_i32_1 = arith.constant 0 : i32
    return %c0_i32, %c0_i32_0 : i32, i32
  }
  func.func @transform_5(%arg0: i32) -> (i32, i32) {
    %c0_i32 = arith.constant 0 : i32
    %c0_i32_0 = arith.constant 0 : i32
    return %arg0, %c0_i32 : i32, i32
  }
}

module attributes {stable_mosaic.version = 11 : i64} {
  func.func @_conv2_cls_kernel(%arg0: i32, %arg1: memref<128x256xbf16, #tpu.memory_space<vmem>>, %arg2: memref<256x2xf32, #tpu.memory_space<vmem>>, %arg3: memref<1x2xf32, #tpu.memory_space<vmem>>, %arg4: memref<2x1xf32, #tpu.memory_space<smem>>, %arg5: memref<1x1xf32, #tpu.memory_space<smem>>, %arg6: memref<128x1xf32, #tpu.memory_space<vmem>>) attributes {dimension_semantics = [#tpu.dimension_semantics<parallel>], iteration_bounds = array<i64: 2>, scalar_prefetch = 0 : i64, scratch_operands = 0 : i64, tpu.core_type = #tpu.core_type<tc>, window_params = [{transform_indices = @transform_0, window_bounds = array<i64: 128, 256>}, {pipeline_mode = #tpu.pipeline_mode<synchronous>, transform_indices = @transform_1, window_bounds = array<i64: 256, 2>}, {pipeline_mode = #tpu.pipeline_mode<synchronous>, transform_indices = @transform_2, window_bounds = array<i64: 1, 2>}, {transform_indices = @transform_3, window_bounds = array<i64: 2, 1>}, {transform_indices = @transform_4, window_bounds = array<i64: 1, 1>}, {transform_indices = @transform_5, window_bounds = array<i64: 128, 1>}]} {
    %c0 = arith.constant 0 : index
    %c0_0 = arith.constant 0 : index
    %0 = vector.load %arg1[%c0, %c0_0] : memref<128x256xbf16, #tpu.memory_space<vmem>>, vector<128x256xbf16>
    %c0_1 = arith.constant 0 : index
    %c0_2 = arith.constant 0 : index
    %1 = vector.load %arg2[%c0_1, %c0_2] : memref<256x2xf32, #tpu.memory_space<vmem>>, vector<256x2xf32>
    %2 = arith.truncf %1 : vector<256x2xf32> to vector<256x2xbf16>
    %cst = arith.constant dense<0.000000e+00> : vector<128x2xf32>
    %3 = tpu.matmul %0, %2, %cst {dimension_numbers = #tpu.dot_dimension_numbers<[1], [0], [0], [1], [0, 0, 1, 1], [], []>} : vector<128x256xbf16>, vector<256x2xbf16>, vector<128x2xf32> -> vector<128x2xf32>
    %c0_3 = arith.constant 0 : index
    %c0_4 = arith.constant 0 : index
    %4 = vector.load %arg3[%c0_3, %c0_4] : memref<1x2xf32, #tpu.memory_space<vmem>>, vector<1x2xf32>
    %5 = vector.broadcast %4 : vector<1x2xf32> to vector<128x2xf32>
    %6 = arith.addf %3, %5 : vector<128x2xf32>
    %7 = math.tanh %6 : vector<128x2xf32>
    %8 = vector.extract_strided_slice %7 {offsets = [0, 0], sizes = [128, 1], strides = [1, 1]} : vector<128x2xf32> to vector<128x1xf32>
    %c0_5 = arith.constant 0 : index
    %c0_6 = arith.constant 0 : index
    %9 = memref.load %arg4[%c0_5, %c0_6] : memref<2x1xf32, #tpu.memory_space<smem>>
    %10 = vector.broadcast %9 : f32 to vector<128x1xf32>
    %11 = arith.mulf %8, %10 : vector<128x1xf32>
    %12 = vector.extract_strided_slice %7 {offsets = [0, 1], sizes = [128, 1], strides = [1, 1]} : vector<128x2xf32> to vector<128x1xf32>
    %c1 = arith.constant 1 : index
    %c0_7 = arith.constant 0 : index
    %13 = memref.load %arg4[%c1, %c0_7] : memref<2x1xf32, #tpu.memory_space<smem>>
    %14 = vector.broadcast %13 : f32 to vector<128x1xf32>
    %15 = arith.mulf %12, %14 : vector<128x1xf32>
    %16 = arith.addf %11, %15 : vector<128x1xf32>
    %c0_8 = arith.constant 0 : index
    %c0_9 = arith.constant 0 : index
    %17 = memref.load %arg5[%c0_8, %c0_9] : memref<1x1xf32, #tpu.memory_space<smem>>
    %18 = vector.broadcast %17 : f32 to vector<128x1xf32>
    %19 = arith.addf %16, %18 : vector<128x1xf32>
    %20 = arith.negf %19 : vector<128x1xf32>
    %21 = math.exp %20 : vector<128x1xf32>
    %cst_10 = arith.constant 1.000000e+00 : f32
    %22 = vector.broadcast %cst_10 : f32 to vector<128x1xf32>
    %23 = arith.addf %22, %21 : vector<128x1xf32>
    %24 = arith.divf %22, %23 : vector<128x1xf32>
    %c0_11 = arith.constant 0 : index
    %c0_12 = arith.constant 0 : index
    %25 = vector.load %arg6[%c0_11, %c0_12] : memref<128x1xf32, #tpu.memory_space<vmem>>, vector<128x1xf32>
    tpu.vector_store %arg6[%c0_11, %c0_12], %24 {strides = array<i32>} : memref<128x1xf32, #tpu.memory_space<vmem>>, vector<128x1xf32>,
    return
  }
  func.func @transform_0(%arg0: i32) -> (i32, i32) {
    %c0_i32 = arith.constant 0 : i32
    %c0_i32_0 = arith.constant 0 : i32
    return %arg0, %c0_i32 : i32, i32
  }
  func.func @transform_1(%arg0: i32) -> (i32, i32) {
    %c0_i32 = arith.constant 0 : i32
    %c0_i32_0 = arith.constant 0 : i32
    %c0_i32_1 = arith.constant 0 : i32
    return %c0_i32, %c0_i32_0 : i32, i32
  }
  func.func @transform_2(%arg0: i32) -> (i32, i32) {
    %c0_i32 = arith.constant 0 : i32
    %c0_i32_0 = arith.constant 0 : i32
    %c0_i32_1 = arith.constant 0 : i32
    return %c0_i32, %c0_i32_0 : i32, i32
  }
  func.func @transform_3(%arg0: i32) -> (i32, i32) {
    %c0_i32 = arith.constant 0 : i32
    %c0_i32_0 = arith.constant 0 : i32
    %c0_i32_1 = arith.constant 0 : i32
    return %c0_i32, %c0_i32_0 : i32, i32
  }
  func.func @transform_4(%arg0: i32) -> (i32, i32) {
    %c0_i32 = arith.constant 0 : i32
    %c0_i32_0 = arith.constant 0 : i32
    %c0_i32_1 = arith.constant 0 : i32
    return %c0_i32, %c0_i32_0 : i32, i32
  }
  func.func @transform_5(%arg0: i32) -> (i32, i32) {
    %c0_i32 = arith.constant 0 : i32
    %c0_i32_0 = arith.constant 0 : i32
    return %arg0, %c0_i32 : i32, i32
  }
}

</mosaic_0001>

<bundles_post_ra>
// kernel: gcn_forward.3
= control target key start
LH: loop header
LB: loop body
LE: loop exit
PB: predicated region body
PF: predicated region fallthrough
CT: control target
= control target key end

     0   :  { %s1505_s0 = inlined_call_operand.vmem [shape: bf16[256,256], index: 0, kind: input, shape index: {}]   ;;  %s1506_s1 = inlined_call_operand.vmem [shape: f32[256,2], index: 1, kind: input, shape index: {}]   ;;  %s1507_s2 = inlined_call_operand.vmem [shape: f32[1,2], index: 2, kind: input, shape index: {}]   ;;  %s1508_s3 = inlined_call_operand.vmem [shape: f32[2,1], index: 3, kind: input, shape index: {}]   ;;  %s1509_s4 = inlined_call_operand.<no memory space> [shape: f32[1,1], index: 4, kind: input, shape index: {}]   ;;  %s1510_s5 = inlined_call_operand.vmem [shape: f32[256,1], index: 5, kind: output, shape index: {}]  }
   0x1   :  { %10 = sst [smem:[#allocation2]] %s1509_s4 }
   0x2   :  { %11 = vsyncpa [#allocation4], 0  ;;  %s1157_s20 = smov 0  }
   0x3 LB: > { %s826_s21 = sadd.s32 4294967295, %s1120_s20   ;;  %p828_p0 = scmp.ge.s32.totalorder %s1120_s20, 1  ;;  %s1120_s20 = sphi %s1157_s20, %s17_s20  }
   0x4   : > { %p158_p1 = scmp.lt.s32.totalorder %s1120_s20, 3  ;;  %s177_s24 = sshll.u32 %s1508_s3, 4  ;;  %s178_s24 = int_to_ptr.vmem [resolvable:$true] %s177_s24 }
   0x5   : > { %p1172_p3 = scmp.eq.s32.totalorder %s826_s21, 0  ;;  %s1095_s26 = scalar_lea.vmem %s178_s24, 32 }
   0x6   : > { %p1168_p2 = pnand %p828_p0, %p158_p1  ;;  %p1096_p6 = scmp.ne.s32.totalorder %s178_s24, %s1095_s26 }
   0x7   : > { %p1103_p10 = scmp.lt.s32.totalorder %s178_s24, %s178_s24  ;;  %p1104_p11 = scmp.lt.s32.totalorder %s1095_s26, %s1095_s26 }
   0x8   : > { %p959_p4 = pneg %p1168_p2 }
   0x9   : > { %p1105_p12 = por %p1104_p11, %p1103_p10 }
   0xa   : > { %p960_p5 = pnand %p1172_p3, %p959_p4 }
   0xc   : > { %p1097_p7 = pneg %p960_p5 }
   0xe   : > { %p1098_p8 = pnand %p1097_p7, %p1096_p6 }
  0x10   : > { %p1099_p9 = pneg %p1098_p8 }
  0x12   : > { %p1106_p13 = pnand %p1105_p12, %p1099_p9 }
  0x14   : > { %1109 = shalt.err (!%p1106_p13)
}
  0x15   : > { %s1122_s27 = smov [#allocation3]   ;;  %203 = sbr.rel (%p1168_p2) target bundleno = 476 (0x1dc), region = 40 }
  0x16   : > { %962 = dma.vmem_to_smem (!%p960_p5), %s178_s24, 32, %s1122_s27, [#allocation4]  }
  0x1c   : > { %1115 = dma.done.wait (%p1172_p3), [#allocation4], 32  }
  0x1d   : > { %1117 = vsyncadd (%p1172_p3), [#allocation4], 4294967264 }
  0x1e   : > { %209 = sfence }
  0x1f   : > { %v279_v0 = vld [vmem:[%s1506_s1 + $0x80] sm:$0xff]  ;;  %v280_v1 = vld [vmem:[%s1506_s1 + $0x88] sm:$0xff]  ;;  %s833_s9 = sshll.u32 %s826_s21, 4  ;;  %v281_v5 = vld [vmem:[%s1506_s1 + $0x90] sm:$0xff]  ;;  %s1123_s29 = smov 127   ;;  %vm741_vm0 = vcmask 7168  }
  0x20   : > { %v263_v2 = vld [vmem:[%s1506_s1] sm:$0xff]  ;;  %v303_v3 = vpack.c.bf16 %v280_v1, %v279_v0  ;;  %v264_v4 = vld [vmem:[%s1506_s1 + $0x8] sm:$0xff]  ;;  %v282_v6 = vld [vmem:[%s1506_s1 + $0x98] sm:$0xff]  ;;  %p234_p0 = scmp.lt.s32.totalorder %s833_s9, 31  ;;  %s511_s30 = sld [smem:[#allocation3]] }
  0x21   : > { %v295_v7 = vpack.c.bf16 %v264_v4, %v263_v2  ;;  %v304_v8 = vpack.c.bf16 %v282_v6, %v281_v5  ;;  %v265_v9 = vld [vmem:[%s1506_s1 + $0x10] sm:$0xff]  ;;  %v266_v10 = vld [vmem:[%s1506_s1 + $0x18] sm:$0xff]  ;;  %v283_v11 = vld [vmem:[%s1506_s1 + $0xa0] sm:$0xff]  ;;  %s627_s6 = sld [smem:[#allocation2]] }
  0x22   : > { %875 = vmatprep.subr.bf16.mxu0 %v303_v3  ;;  %939 = vmatprep.subr.bf16.mxu1 %v303_v3  ;;  %v284_v12 = vld [vmem:[%s1506_s1 + $0xa8] sm:$0xff]  ;;  %s1514_s9 = smov (!%p234_p0, %s833_s9), 31  ;;  %v296_v13 = vpack.c.bf16 %v266_v10, %v265_v9  ;;  %v267_v15 = vld [vmem:[%s1506_s1 + $0x20] sm:$0xff]  ;;  %v285_v17 = vld [vmem:[%s1506_s1 + $0xb0] sm:$0xff] }
  0x23   : > { %876 = vmatpush3.bf16.msra.mxu0 %v295_v7  ;;  %947 = vmatpush3.bf16.msra.mxu1 %v295_v7  ;;  %v305_v14 = vpack.c.bf16 %v284_v12, %v283_v11  ;;  %v268_v16 = vld [vmem:[%s1506_s1 + $0x28] sm:$0xff]  ;;  %s874_s28 = sshll.u32 %s1514_s9, 3  ;;  %v286_v18 = vld [vmem:[%s1506_s1 + $0xb8] sm:$0xff]  ;;  %v269_v21 = vld [vmem:[%s1506_s1 + $0x30] sm:$0xff] }
  0x24   : > { %877 = vmatprep.subr.bf16.mxu0 %v304_v8  ;;  %940 = vmatprep.subr.bf16.mxu1 %v304_v8  ;;  %v297_v19 = vpack.c.bf16 %v268_v16, %v267_v15  ;;  %s1236_s11 = scalar_lea.vmem %s1505_s0, %s874_s28  ;;  %v306_v20 = vpack.c.bf16 %v286_v18, %v285_v17  ;;  %v270_v22 = vld [vmem:[%s1506_s1 + $0x38] sm:$0xff]  ;;  %v287_v23 = vld [vmem:[%s1506_s1 + $0xc0] sm:$0xff]  ;;  %v288_v24 = vld [vmem:[%s1506_s1 + $0xc8] sm:$0xff]  ;;  %s1461_s10 = scalar_lea.vmem %s1510_s5, %s874_s28 }
  0x25   : > { %v271_v25 = vld [vmem:[%s1506_s1 + $0x40] sm:$0xff]  ;;  %v298_v27 = vpack.c.bf16 %v270_v22, %v269_v21  ;;  %v272_v28 = vld [vmem:[%s1506_s1 + $0x48] sm:$0xff]  ;;  %v307_v29 = vpack.c.bf16 %v288_v24, %v287_v23  ;;  %v289_v31 = vld [vmem:[%s1506_s1 + $0xd0] sm:$0xff] }
  0x26   : > { %v977_v26 = vld [vmem:[%s1236_s11 + $0x4] ss:$8 sps:$4 sm:$0xff]   ;;  %v290_v32 = vld [vmem:[%s1506_s1 + $0xd8] sm:$0xff]  ;;  %v299_v33 = vpack.c.bf16 %v272_v28, %v271_v25  ;;  %v273_v34 = vld [vmem:[%s1506_s1 + $0x50] sm:$0xff] }
  0x27   : > { %878 = vmatpush3.bf16.msra.mxu0 %v296_v13  ;;  %948 = vmatpush3.bf16.msra.mxu1 %v296_v13  ;;  %v980_v30 = vld [vmem:[%s1236_s11 + $0x44] ss:$8 sps:$4 sm:$0xff]   ;;  %v308_v35 = vpack.c.bf16 %v290_v32, %v289_v31  ;;  %v274_v36 = vld [vmem:[%s1506_s1 + $0x58] sm:$0xff]  ;;  %v293_v43 = vld [vmem:[%s1506_s1 + $0xf0] sm:$0xff] }
  0x28   : > { %879 = vmatprep.subr.bf16.mxu0 %v305_v14  ;;  %941 = vmatprep.subr.bf16.mxu1 %v305_v14  ;;  %v291_v37 = vld [vmem:[%s1506_s1 + $0xe0] sm:$0xff]  ;;  %v292_v38 = vld [vmem:[%s1506_s1 + $0xe8] sm:$0xff]  ;;  %v300_v39 = vpack.c.bf16 %v274_v36, %v273_v34  ;;  %v294_v44 = vld [vmem:[%s1506_s1 + $0xf8] sm:$0xff] }
  0x29   : > { %430 = vmatprep.mubr.bf16.mxu0 %v977_v26  ;;  %462 = vmatprep.mubr.bf16.mxu1 %v980_v30  ;;  %v309_v40 = vpack.c.bf16 %v292_v38, %v291_v37  ;;  %v275_v41 = vld [vmem:[%s1506_s1 + $0x60] sm:$0xff]  ;;  %v276_v42 = vld [vmem:[%s1506_s1 + $0x68] sm:$0xff]  ;;  %v310_v46 = vpack.c.bf16 %v294_v44, %v293_v43  ;;  %v277_v47 = vld [vmem:[%s1506_s1 + $0x70] sm:$0xff] }
  0x2a   : > { %v301_v45 = vpack.c.bf16 %v276_v42, %v275_v41  ;;  %v278_v48 = vld [vmem:[%s1506_s1 + $0x78] sm:$0xff]  ;;  %v975_v50 = vld [vmem:[%s1236_s11] ss:$8 sps:$4 sm:$0xff]   ;;  %v987_v56 = vld [vmem:[%s1236_s11 + $0x24] ss:$8 sps:$4 sm:$0xff]  }
  0x2b   : > { %880 = vmatpush3.bf16.msra.mxu0 %v297_v19  ;;  %949 = vmatpush3.bf16.msra.mxu1 %v297_v19  ;;  %v302_v49 = vpack.c.bf16 %v278_v48, %v277_v47  ;;  %v978_v51 = vld [vmem:[%s1236_s11 + $0x40] ss:$8 sps:$4 sm:$0xff]   ;;  %v981_v52 = vld [vmem:[%s1236_s11 + $0x14] ss:$8 sps:$4 sm:$0xff]   ;;  %v983_v54 = vld [vmem:[%s1236_s11 + $0x10] ss:$8 sps:$4 sm:$0xff]  }
  0x2c   : > { %881 = vmatprep.subr.bf16.mxu0 %v306_v20  ;;  %942 = vmatprep.subr.bf16.mxu1 %v306_v20  ;;  %v984_v53 = vld [vmem:[%s1236_s11 + $0x54] ss:$8 sps:$4 sm:$0xff]   ;;  %v986_v55 = vld [vmem:[%s1236_s11 + $0x50] ss:$8 sps:$4 sm:$0xff]   ;;  %v990_v57 = vld [vmem:[%s1236_s11 + $0x64] ss:$8 sps:$4 sm:$0xff]  }
  0x2d   : > { %v989_v58 = vld [vmem:[%s1236_s11 + $0x20] ss:$8 sps:$4 sm:$0xff]   ;;  %v993_v60 = vld [vmem:[%s1236_s11 + $0x34] ss:$8 sps:$4 sm:$0xff]   ;;  %v995_v62 = vld [vmem:[%s1236_s11 + $0x30] ss:$8 sps:$4 sm:$0xff]  }
  0x2e   : > { %v992_v59 = vld [vmem:[%s1236_s11 + $0x60] ss:$8 sps:$4 sm:$0xff]   ;;  %v996_v61 = vld [vmem:[%s1236_s11 + $0x74] ss:$8 sps:$4 sm:$0xff]   ;;  %v998_v63 = vld [vmem:[%s1236_s11 + $0x70] ss:$8 sps:$4 sm:$0xff]  }
  0x2f   : > { %882 = vmatpush3.bf16.msra.mxu0 %v298_v27  ;;  %950 = vmatpush3.bf16.msra.mxu1 %v298_v27  ;;  %v1311_v2 = vld [vmem:[%s1507_s2] ss:$0 sm:$0xff]  ;;  %s855_s11 = sld [smem:[#allocation3 + $0x80]] }
  0x30   : > { %883 = vmatprep.subr.bf16.mxu0 %v307_v29  ;;  %943 = vmatprep.subr.bf16.mxu1 %v307_v29 }
  0x33   : > { %884 = vmatpush3.bf16.msra.mxu0 %v299_v33  ;;  %951 = vmatpush3.bf16.msra.mxu1 %v299_v33 }
  0x34   : > { %885 = vmatprep.subr.bf16.mxu0 %v308_v35  ;;  %944 = vmatprep.subr.bf16.mxu1 %v308_v35 }
  0x35   : > { %v1320_v32 = vstv %s855_s11 }
  0x37   : > { %886 = vmatpush3.bf16.msra.mxu0 %v300_v39  ;;  %952 = vmatpush3.bf16.msra.mxu1 %v300_v39 }
  0x38   : > { %887 = vmatprep.subr.bf16.mxu0 %v309_v40  ;;  %945 = vmatprep.subr.bf16.mxu1 %v309_v40 }
  0x3b   : > { %888 = vmatpush3.bf16.msra.mxu0 %v301_v45  ;;  %953 = vmatpush3.bf16.msra.mxu1 %v301_v45 }
  0x3c   : > { %889 = vmatprep.subr.bf16.mxu0 %v310_v46  ;;  %946 = vmatprep.subr.bf16.mxu1 %v310_v46 }
  0x3f   : > { %890 = vmatpush3.bf16.msra.mxu0 %v302_v49  ;;  %954 = vmatpush3.bf16.msra.mxu1 %v302_v49 }
  0x42   : > { %431 = vmatmul.mubr.bf16.vlgmr.msra.gmra.mrb[0].mxu0 %v975_v50  ;;  %463 = vmatmul.mubr.bf16.vlgmr.msra.gmra.mrb[0].mxu1 %v978_v51 }
  0x43   : > { %438 = vmatprep.mubr.bf16.mxu0 %v981_v52  ;;  %470 = vmatprep.mubr.bf16.mxu1 %v984_v53 }
  0x4a   : > { %439 = vmatmul.mubr.bf16.gmra.mrb[4].mxu0 %v983_v54  ;;  %471 = vmatmul.mubr.bf16.gmra.mrb[4].mxu1 %v986_v55 }
  0x4b   : > { %446 = vmatprep.mubr.bf16.mxu0 %v987_v56  ;;  %478 = vmatprep.mubr.bf16.mxu1 %v990_v57 }
  0x52   : > { %447 = vmatmul.mubr.bf16.gmra.mrb[8].mxu0 %v989_v58  ;;  %479 = vmatmul.mubr.bf16.gmra.mrb[8].mxu1 %v992_v59 }
  0x53   : > { %454 = vmatprep.mubr.bf16.mxu0 %v993_v60  ;;  %486 = vmatprep.mubr.bf16.mxu1 %v996_v61 }
  0x5a   : > { %455 = vmatmul.mubr.bf16.gmra.mrb[12].mxu0 %v995_v62  ;;  %487 = vmatmul.mubr.bf16.gmra.mrb[12].mxu1 %v998_v63 }
 0x115   : > { %v891_v0 = vpop.f32.mrb[0].mxu0  ;;  %v915_v1 = vpop.f32.mrb[0].mxu1 }
 0x116   : > { %v892_v3 = vpop.f32.mrb[1].mxu0  ;;  %v916_v4 = vpop.f32.mrb[1].mxu1 }
 0x117   : > { %v893_v5 = vadd.f32 %v892_v3, %v891_v0  ;;  %v917_v6 = vadd.f32 %v916_v4, %v915_v1  ;;  %v894_v7 = vpop.f32.mrb[2].mxu0  ;;  %v918_v8 = vpop.f32.mrb[2].mxu1 }
 0x118   : > { %v895_v9 = vpop.f32.mrb[3].mxu0  ;;  %v919_v10 = vpop.f32.mrb[3].mxu1 }
 0x119   : > { %v433_v11 = vadd.f32 %v893_v5, %v1311_v2  ;;  %v465_v12 = vadd.f32 %v917_v6, %v1311_v2  ;;  %v896_v13 = vadd.f32 %v895_v9, %v894_v7  ;;  %v920_v14 = vadd.f32 %v919_v10, %v918_v8 }
 0x11b   : > { %999 = vtanh.f32 %v433_v11  ;;  %v468_v15 = vadd.f32 %v920_v14, %v1311_v2  ;;  %v436_v16 = vadd.f32 %v896_v13, %v1311_v2 }
 0x11c   : > { %1001 = vtanh.f32 %v465_v12 }
 0x11d   : > { %v897_v17 = vpop.f32.mrb[4].mxu0  ;;  %v921_v18 = vpop.f32.mrb[4].mxu1  ;;  %1003 = vtanh.f32 %v468_v15 }
 0x11e   : > { %v898_v19 = vpop.f32.mrb[5].mxu0  ;;  %v922_v20 = vpop.f32.mrb[5].mxu1  ;;  %1005 = vtanh.f32 %v436_v16 }
 0x11f   : > { %v899_v21 = vadd.f32 %v898_v19, %v897_v17  ;;  %v900_v22 = vpop.f32.mrb[6].mxu0  ;;  %v923_v23 = vadd.f32 %v922_v20, %v921_v18  ;;  %v924_v24 = vpop.f32.mrb[6].mxu1 }
 0x120   : > { %v901_v25 = vpop.f32.mrb[7].mxu0  ;;  %v925_v26 = vpop.f32.mrb[7].mxu1 }
 0x121   : > { %v441_v27 = vadd.f32 %v899_v21, %v1311_v2  ;;  %v902_v28 = vadd.f32 %v901_v25, %v900_v22  ;;  %v473_v29 = vadd.f32 %v923_v23, %v1311_v2  ;;  %v926_v30 = vadd.f32 %v925_v26, %v924_v24 }
 0x123   : > { %1007 = vtanh.f32 %v441_v27  ;;  %v444_v31 = vadd.f32 %v902_v28, %v1311_v2  ;;  %v476_v33 = vadd.f32 %v926_v30, %v1311_v2 }
 0x124   : > { %1009 = vtanh.f32 %v473_v29 }
 0x125   : > { %v1323_v34 = vpop.eup %999  ;;  %1011 = vtanh.f32 %v444_v31  ;;  %v903_v35 = vpop.f32.mrb[8].mxu0 }
 0x126   : > { %v927_v36 = vpop.f32.mrb[8].mxu1  ;;  %v904_v37 = vpop.f32.mrb[9].mxu0  ;;  %v531_v38 = vmul.f32 %v1323_v34, %v1320_v32  ;;  %1013 = vtanh.f32 %v476_v33 }
 0x127   : > { %v928_v39 = vpop.f32.mrb[9].mxu1  ;;  %v1327_v40 = vpop.eup %1001  ;;  %v905_v41 = vadd.f32 %v904_v37, %v903_v35 }
 0x128   : > { %v906_v42 = vpop.f32.mrb[10].mxu0  ;;  %v929_v43 = vadd.f32 %v928_v39, %v927_v36  ;;  %v930_v44 = vpop.f32.mrb[10].mxu1  ;;  %563 = vrot.lane.b32.xlu0 %v531_v38, %s1123_s29  ;;  %v539_v54 = vmul.f32 %v1327_v40, %v1320_v32  ;;  %v1411_v36 = vstv %s511_s30  ;;  %v1415_v38 = vstv %s627_s6 }
 0x129   : > { %v1329_v45 = vpop.eup %1003  ;;  %v907_v46 = vpop.f32.mrb[11].mxu0  ;;  %v449_v48 = vadd.f32 %v905_v41, %v1311_v2  ;;  %v513_v37 = vmul.f32 %v1323_v34, %v1411_v36 }
 0x12a   : > { %v931_v47 = vpop.f32.mrb[11].mxu1  ;;  %v908_v49 = vadd.f32 %v907_v46, %v906_v42  ;;  %v481_v50 = vadd.f32 %v929_v43, %v1311_v2  ;;  %v540_v51 = vmul.f32 %v1329_v45, %v1320_v32  ;;  %v1336_v52 = vpop.eup %1005  ;;  %v522_v42 = vmul.f32 %v1329_v45, %v1411_v36 }
 0x12b   : > { %v932_v53 = vadd.f32 %v931_v47, %v930_v44  ;;  %1015 = vtanh.f32 %v449_v48  ;;  %v532_v63 = vmul.f32 %v1336_v52, %v1320_v32  ;;  %v514_v45 = vmul.f32 %v1336_v52, %v1411_v36 }
 0x12c   : > { %v452_v55 = vadd.f32 %v908_v49, %v1311_v2  ;;  %581 = vrot.lane.b32.xlu1 %v540_v51, %s1123_s29  ;;  %1017 = vtanh.f32 %v481_v50  ;;  %579 = vrot.lane.b32.xlu0 %v539_v54, %s1123_s29 }
 0x12d   : > { %v484_v56 = vadd.f32 %v932_v53, %v1311_v2  ;;  %v1344_v57 = vpop.eup %1007  ;;  %v909_v58 = vpop.f32.mrb[12].mxu0 }
 0x12e   : > { %1019 = vtanh.f32 %v452_v55  ;;  %v933_v59 = vpop.f32.mrb[12].mxu1  ;;  %v1346_v60 = vpop.eup %1009  ;;  %v533_v62 = vmul.f32 %v1344_v57, %v1320_v32  ;;  %v515_v51 = vmul.f32 %v1344_v57, %v1411_v36 }
 0x12f   : > { %v910_v61 = vpop.f32.mrb[13].mxu0  ;;  %v934_v0 = vpop.f32.mrb[13].mxu1  ;;  %1021 = vtanh.f32 %v484_v56  ;;  %v541_v9 = vmul.f32 %v1346_v60, %v1320_v32 }
 0x130   : > { %v1352_v1 = vpop.eup %1011  ;;  %v911_v3 = vadd.f32 %v910_v61, %v909_v58  ;;  %v912_v4 = vpop.f32.mrb[14].mxu0  ;;  %v935_v5 = vadd.f32 %v934_v0, %v933_v59  ;;  %567 = vrot.lane.b32.xlu1 %v533_v62, %s1123_s29  ;;  %565 = vrot.lane.b32.xlu0 %v532_v63, %s1123_s29  ;;  %v523_v59 = vmul.f32 %v1346_v60, %v1411_v36 }
 0x131   : > { %v936_v6 = vpop.f32.mrb[14].mxu1  ;;  %v913_v7 = vpop.f32.mrb[15].mxu0  ;;  %v534_v15 = vmul.f32 %v1352_v1, %v1320_v32  ;;  %v516_v57 = vmul.f32 %v1352_v1, %v1411_v36 }
 0x132   : > { %v937_v8 = vpop.f32.mrb[15].mxu1  ;;  %v457_v10 = vadd.f32 %v911_v3, %v1311_v2  ;;  %v914_v11 = vadd.f32 %v913_v7, %v912_v4  ;;  %v489_v12 = vadd.f32 %v935_v5, %v1311_v2  ;;  %v1360_v14 = vpop.eup %1013 }
 0x133   : > { %v938_v13 = vadd.f32 %v937_v8, %v936_v6  ;;  %v542_v20 = vmul.f32 %v1360_v14, %v1320_v32  ;;  %v524_v6 = vmul.f32 %v1360_v14, %v1411_v36 }
 0x134   : > { %1023 = vtanh.f32 %v457_v10  ;;  %v460_v16 = vadd.f32 %v914_v11, %v1311_v2  ;;  %569 = vrot.lane.b32.xlu1 %v534_v15, %s1123_s29  ;;  %583 = vrot.lane.b32.xlu0 %v541_v9, %s1123_s29 }
 0x135   : > { %1025 = vtanh.f32 %v489_v12  ;;  %v1367_v17 = vpop.eup %1015  ;;  %v492_v18 = vadd.f32 %v938_v13, %v1311_v2 }
 0x136   : > { %1027 = vtanh.f32 %v460_v16  ;;  %v1370_v19 = vpop.eup %1017  ;;  %v535_v21 = vmul.f32 %v1367_v17, %v1320_v32  ;;  %v517_v8 = vmul.f32 %v1367_v17, %v1411_v36 }
 0x137   : > { %v543_v23 = vmul.f32 %v1370_v19, %v1320_v32  ;;  %1029 = vtanh.f32 %v492_v18 }
 0x138   : > { %v1376_v22 = vpop.eup %1019  ;;  %585 = vrot.lane.b32.xlu1 %v542_v20, %s1123_s29  ;;  %571 = vrot.lane.b32.xlu0 %v535_v21, %s1123_s29 }
 0x139   : > { %v1382_v24 = vpop.eup %1021  ;;  %v536_v2 = vmul.f32 %v1376_v22, %v1320_v32  ;;  %v518_v21 = vmul.f32 %v1376_v22, %v1411_v36 }
 0x13a   : > { %v544_v27 = vmul.f32 %v1382_v24, %v1320_v32 }
 0x13c   : > { %573 = vrot.lane.b32.xlu1 %v536_v2, %s1123_s29  ;;  %587 = vrot.lane.b32.xlu0 %v543_v23, %s1123_s29  ;;  %v525_v23 = vmul.f32 %v1370_v19, %v1411_v36 }
 0x13e   : > { %v1388_v25 = vpop.eup %1023 }
 0x13f   : > { %v1390_v26 = vpop.eup %1025  ;;  %v537_v28 = vmul.f32 %v1388_v25, %v1320_v32  ;;  %v519_v22 = vmul.f32 %v1388_v25, %v1411_v36 }
 0x140   : > { %v1396_v29 = vpop.eup %1027  ;;  %589 = vrot.lane.b32.xlu1 %v544_v27, %s1123_s29  ;;  %v545_v30 = vmul.f32 %v1390_v26, %v1320_v32 }
 0x141   : > { %575 = vrot.lane.b32.xlu0 %v537_v28, %s1123_s29  ;;  %v538_v31 = vmul.f32 %v1396_v29, %v1320_v32  ;;  %v1404_v33 = vpop.eup %1029 }
 0x142   : > { %v546_v35 = vmul.f32 %v1404_v33, %v1320_v32  ;;  %v521_v32 = vmul.f32 %v1327_v40, %v1411_v36 }
 0x144   : > { %577 = vrot.lane.b32.xlu1 %v538_v31, %s1123_s29 }
 0x145   : > { %591 = vrot.lane.b32.xlu0 %v545_v30, %s1123_s29 }
 0x148   : > { %593 = vrot.lane.b32.xlu1 %v546_v35, %s1123_s29 }
 0x19a   : > { %v564_v39 = vpop.permute.xlu0 %563 }
 0x19b   : > { %v611_v41 = vadd.f32 %v564_v39, %v513_v37 }
 0x19d   : > { %v629_v43 = vadd.f32 %v1415_v38, %v611_v41  ;;  %v526_v41 = vmul.f32 %v1382_v24, %v1411_v36  ;;  %v520_v24 = vmul.f32 %v1396_v29, %v1411_v36 }
 0x19e   : > { %v582_v44 = vpop.permute.xlu1 %581  ;;  %v580_v47 = vpop.permute.xlu0 %579 }
 0x19f   : > { %v620_v46 = vadd.f32 %v582_v44, %v522_v42  ;;  %v856_v48 = vmul.f32 -1.442695, %v629_v43  ;;  %v619_v49 = vadd.f32 %v580_v47, %v521_v32 }
 0x1a1   : > { %v638_v50 = vadd.f32 %v1415_v38, %v620_v46  ;;  %1031 = vpow2.f32 %v856_v48  ;;  %v637_v34 = vadd.f32 %v1415_v38, %v619_v49 }
 0x1a2   : > { %v568_v54 = vpop.permute.xlu1 %567  ;;  %v566_v55 = vpop.permute.xlu0 %565 }
 0x1a3   : > { %v865_v53 = vmul.f32 -1.442695, %v638_v50  ;;  %v864_v56 = vmul.f32 -1.442695, %v637_v34  ;;  %v613_v40 = vadd.f32 %v568_v54, %v515_v51  ;;  %v612_v58 = vadd.f32 %v566_v55, %v514_v45 }
 0x1a4   : > { %v527_v54 = vmul.f32 %v1390_v26, %v1411_v36  ;;  %v528_v26 = vmul.f32 %v1404_v33, %v1411_v36 }
 0x1a5   : > { %1033 = vpow2.f32 %v865_v53  ;;  %v631_v61 = vadd.f32 %v1415_v38, %v613_v40  ;;  %v630_v62 = vadd.f32 %v1415_v38, %v612_v58 }
 0x1a6   : > { %1035 = vpow2.f32 %v864_v56  ;;  %v570_v63 = vpop.permute.xlu1 %569  ;;  %v584_v52 = vpop.permute.xlu0 %583 }
 0x1a7   : > { %v858_v0 = vmul.f32 -1.442695, %v631_v61  ;;  %v857_v3 = vmul.f32 -1.442695, %v630_v62  ;;  %v614_v4 = vadd.f32 %v570_v63, %v516_v57  ;;  %v621_v5 = vadd.f32 %v584_v52, %v523_v59 }
 0x1a9   : > { %1037 = vpow2.f32 %v858_v0  ;;  %v632_v60 = vadd.f32 %v1415_v38, %v614_v4  ;;  %v639_v7 = vadd.f32 %v1415_v38, %v621_v5 }
 0x1aa   : > { %1039 = vpow2.f32 %v857_v3  ;;  %v586_v9 = vpop.permute.xlu1 %585  ;;  %v572_v1 = vpop.permute.xlu0 %571 }
 0x1ab   : > { %v1032_v10 = vpop.eup %1031  ;;  %v859_v11 = vmul.f32 -1.442695, %v632_v60  ;;  %v866_v12 = vmul.f32 -1.442695, %v639_v7  ;;  %v622_v13 = vadd.f32 %v586_v9, %v524_v6  ;;  %v615_v15 = vadd.f32 %v572_v1, %v517_v8 }
 0x1ac   : > { %v693_v16 = vadd.f32 1.0, %v1032_v10 }
 0x1ad   : > { %1041 = vpow2.f32 %v859_v11  ;;  %v640_v14 = vadd.f32 %v1415_v38, %v622_v13  ;;  %v633_v18 = vadd.f32 %v1415_v38, %v615_v15 }
 0x1ae   : > { %1043 = vrcp.f32 %v693_v16  ;;  %v574_v17 = vpop.permute.xlu1 %573  ;;  %v588_v2 = vpop.permute.xlu0 %587 }
 0x1af   : > { %v1034_v20 = vpop.eup %1033  ;;  %1045 = vpow2.f32 %v866_v12  ;;  %v867_v30 = vmul.f32 -1.442695, %v640_v14  ;;  %v860_v35 = vmul.f32 -1.442695, %v633_v18  ;;  %v616_v37 = vadd.f32 %v574_v17, %v518_v21 }
 0x1b0   : > { %v1036_v27 = vpop.eup %1035  ;;  %v702_v28 = vadd.f32 1.0, %v1034_v20  ;;  %v623_v39 = vadd.f32 %v588_v2, %v525_v23 }
 0x1b1   : > { %v701_v31 = vadd.f32 1.0, %v1036_v27  ;;  %v634_v42 = vadd.f32 %v1415_v38, %v616_v37 }
 0x1b2   : > { %1047 = vrcp.f32 %v702_v28  ;;  %v641_v19 = vadd.f32 %v1415_v38, %v623_v39  ;;  %v590_v43 = vpop.permute.xlu1 %589 }
 0x1b3   : > { %1049 = vrcp.f32 %v701_v31  ;;  %v576_v44 = vpop.permute.xlu0 %575  ;;  %v1038_v32 = vpop.eup %1037  ;;  %v624_v46 = vadd.f32 %v590_v43, %v526_v41  ;;  %v861_v50 = vmul.f32 -1.442695, %v634_v42 }
 0x1b4   : > { %1051 = vpow2.f32 %v867_v30  ;;  %v617_v47 = vadd.f32 %v576_v44, %v519_v22  ;;  %v1040_v48 = vpop.eup %1039  ;;  %v695_v49 = vadd.f32 1.0, %v1038_v32  ;;  %v868_v34 = vmul.f32 -1.442695, %v641_v19 }
 0x1b5   : > { %1053 = vpow2.f32 %v860_v35  ;;  %v694_v25 = vadd.f32 1.0, %v1040_v48  ;;  %v642_v51 = vadd.f32 %v1415_v38, %v624_v46 }
 0x1b6   : > { %v635_v45 = vadd.f32 %v1415_v38, %v617_v47  ;;  %1055 = vrcp.f32 %v695_v49  ;;  %v578_v53 = vpop.permute.xlu1 %577 }
 0x1b7   : > { %v592_v29 = vpop.permute.xlu0 %591  ;;  %v1042_v55 = vpop.eup %1041  ;;  %1057 = vrcp.f32 %v694_v25  ;;  %v869_v56 = vmul.f32 -1.442695, %v642_v51  ;;  %v618_v40 = vadd.f32 %v578_v53, %v520_v24 }
 0x1b8   : > { %v1044_v58 = vpop.eup %1043  ;;  %v696_v59 = vadd.f32 1.0, %v1042_v55  ;;  %1059 = vpow2.f32 %v861_v50  ;;  %v625_v61 = vadd.f32 %v592_v29, %v527_v54  ;;  %v862_v57 = vmul.f32 -1.442695, %v635_v45 }
 0x1b9   : > { %v1046_v62 = vpop.eup %1045  ;;  %742 = vst.msk [vmem:[%s1461_s10] sm:$0xff] %vm741_vm0, %v1044_v58  ;;  %1061 = vpow2.f32 %v868_v34  ;;  %v636_v63 = vadd.f32 %v1415_v38, %v618_v40 }
 0x1ba   : > { %1063 = vrcp.f32 %v696_v59  ;;  %v703_v52 = vadd.f32 1.0, %v1046_v62  ;;  %v643_v0 = vadd.f32 %v1415_v38, %v625_v61  ;;  %v594_v3 = vpop.permute.xlu1 %593 }
 0x1bb   : > { %1065 = vpow2.f32 %v869_v56  ;;  %v863_v5 = vmul.f32 -1.442695, %v636_v63  ;;  %v626_v6 = vadd.f32 %v594_v3, %v528_v26 }
 0x1bc   : > { %v1048_v4 = vpop.eup %1047  ;;  %1067 = vrcp.f32 %v703_v52  ;;  %v870_v7 = vmul.f32 -1.442695, %v643_v0 }
 0x1bd   : > { %v1050_v60 = vpop.eup %1049  ;;  %751 = vst.msk [vmem:[%s1461_s10 + $0x48] sm:$0xff] %vm741_vm0, %v1048_v4  ;;  %1069 = vpow2.f32 %v862_v57  ;;  %v644_v33 = vadd.f32 %v1415_v38, %v626_v6 }
 0x1be   : > { %v1052_v8 = vpop.eup %1051  ;;  %750 = vst.msk [vmem:[%s1461_s10 + $0x40] sm:$0xff] %vm741_vm0, %v1050_v60  ;;  %1071 = vpow2.f32 %v863_v5 }
 0x1bf   : > { %v1054_v36 = vpop.eup %1053  ;;  %v704_v9 = vadd.f32 1.0, %v1052_v8  ;;  %1073 = vpow2.f32 %v870_v7  ;;  %v871_v10 = vmul.f32 -1.442695, %v644_v33 }
 0x1c0   : > { %v697_v1 = vadd.f32 1.0, %v1054_v36  ;;  %v1056_v11 = vpop.eup %1055 }
 0x1c1   : > { %1075 = vrcp.f32 %v704_v9  ;;  %v1058_v12 = vpop.eup %1057  ;;  %744 = vst.msk [vmem:[%s1461_s10 + $0x10] sm:$0xff] %vm741_vm0, %v1056_v11 }
 0x1c2   : > { %1077 = vrcp.f32 %v697_v1  ;;  %v1060_v13 = vpop.eup %1059  ;;  %743 = vst.msk [vmem:[%s1461_s10 + $0x8] sm:$0xff] %vm741_vm0, %v1058_v12 }
 0x1c3   : > { %1079 = vpow2.f32 %v871_v10  ;;  %v1062_v15 = vpop.eup %1061  ;;  %v698_v38 = vadd.f32 1.0, %v1060_v13 }
 0x1c4   : > { %v1064_v16 = vpop.eup %1063  ;;  %v705_v14 = vadd.f32 1.0, %v1062_v15 }
 0x1c5   : > { %v1066_v18 = vpop.eup %1065  ;;  %745 = vst.msk [vmem:[%s1461_s10 + $0x18] sm:$0xff] %vm741_vm0, %v1064_v16  ;;  %1081 = vrcp.f32 %v698_v38 }
 0x1c6   : > { %v1068_v20 = vpop.eup %1067  ;;  %1083 = vrcp.f32 %v705_v14  ;;  %v706_v21 = vadd.f32 1.0, %v1066_v18 }
 0x1c7   : > { %v1070_v17 = vpop.eup %1069  ;;  %752 = vst.msk [vmem:[%s1461_s10 + $0x50] sm:$0xff] %vm741_vm0, %v1068_v20 }
 0x1c8   : > { %v1072_v23 = vpop.eup %1071  ;;  %1085 = vrcp.f32 %v706_v21  ;;  %v699_v2 = vadd.f32 1.0, %v1070_v17 }
 0x1c9   : > { %v1074_v27 = vpop.eup %1073  ;;  %v700_v28 = vadd.f32 1.0, %v1072_v23 }
 0x1ca   : > { %1087 = vrcp.f32 %v699_v2  ;;  %v707_v31 = vadd.f32 1.0, %v1074_v27 }
 0x1cb   : > { %v1076_v30 = vpop.eup %1075  ;;  %1089 = vrcp.f32 %v700_v28 }
 0x1cc   : > { %v1078_v35 = vpop.eup %1077  ;;  %753 = vst.msk [vmem:[%s1461_s10 + $0x58] sm:$0xff] %vm741_vm0, %v1076_v30  ;;  %1091 = vrcp.f32 %v707_v31 }
 0x1cd   : > { %v1080_v37 = vpop.eup %1079  ;;  %746 = vst.msk [vmem:[%s1461_s10 + $0x20] sm:$0xff] %vm741_vm0, %v1078_v35 }
 0x1ce   : > { %v708_v39 = vadd.f32 1.0, %v1080_v37 }
 0x1cf   : > { %v1082_v41 = vpop.eup %1081 }
 0x1d0   : > { %1093 = vrcp.f32 %v708_v39  ;;  %v1084_v22 = vpop.eup %1083  ;;  %747 = vst.msk [vmem:[%s1461_s10 + $0x28] sm:$0xff] %vm741_vm0, %v1082_v41 }
 0x1d1   : > { %754 = vst.msk [vmem:[%s1461_s10 + $0x60] sm:$0xff] %vm741_vm0, %v1084_v22 }
 0x1d2   : > { %v1086_v42 = vpop.eup %1085 }
 0x1d3   : > { %755 = vst.msk [vmem:[%s1461_s10 + $0x68] sm:$0xff] %vm741_vm0, %v1086_v42 }
 0x1d4   : > { %v1088_v19 = vpop.eup %1087 }
 0x1d5   : > { %v1090_v43 = vpop.eup %1089  ;;  %748 = vst.msk [vmem:[%s1461_s10 + $0x30] sm:$0xff] %vm741_vm0, %v1088_v19 }
 0x1d6   : > { %v1092_v44 = vpop.eup %1091  ;;  %749 = vst.msk [vmem:[%s1461_s10 + $0x38] sm:$0xff] %vm741_vm0, %v1090_v43 }
 0x1d7   : > { %756 = vst.msk [vmem:[%s1461_s10 + $0x70] sm:$0xff] %vm741_vm0, %v1092_v44 }
 0x1da   : > { %v1094_v32 = vpop.eup %1093 }
 0x1db   : > { %757 = vst.msk [vmem:[%s1461_s10 + $0x78] sm:$0xff] %vm741_vm0, %v1094_v32 }
 0x1dc PF: > { %s17_s20 = sadd.s32 1, %s1120_s20  }
 0x1dd   : > { %p14_p1 = scmp.ge.s32.totalorder %s17_s20, 4  }
 0x1df   :  { %16 = sbr.rel (!%p14_p1) target bundleno = 3 (0x3), region = 75 }
 0x1e6   :  { %780 = vsyncpa [#allocation4], 1 }
 0x1e7   :  { %782 = vsyncpa [#allocation4 + $0x1], 1 }

// kernel: gcn_forward.2
= control target key start
LH: loop header
LB: loop body
LE: loop exit
PB: predicated region body
PF: predicated region fallthrough
CT: control target
= control target key end

     0   :  { %s1511_s18 = smov 0   ;;  %s1776_s0 = inlined_call_operand.vmem [shape: bf16[256,256], index: 0, kind: input, shape index: {}]   ;;  %s1777_s1 = inlined_call_operand.vmem [shape: bf16[256,256], index: 1, kind: input, shape index: {}]   ;;  %s1778_s2 = inlined_call_operand.vmem [shape: bf16[256,128], index: 2, kind: input, shape index: {}]   ;;  %s1779_s3 = inlined_call_operand.vmem [shape: f32[1,128], index: 3, kind: input, shape index: {}]   ;;  %s1780_s4 = inlined_call_operand.vmem [shape: bf16[128,2], index: 4, kind: input, shape index: {}]   ;;  %s1781_s5 = inlined_call_operand.vmem [shape: f32[256,2], index: 5, kind: output, shape index: {}]  }
   0x1 LB: > { %s1139_s19 = sadd.s32 4294967295, %s1479_s18   ;;  %p1143_p0 = scmp.ge.s32.totalorder %s1479_s18, 1  ;;  %s1479_s18 = sphi %s1511_s18, %s15_s18  }
   0x2   : > { %p189_p1 = scmp.lt.s32.totalorder %s1479_s18, 3 }
   0x4   : > { %p190_p2 = pnand %p1143_p0, %p189_p1 }
   0x5   : > { %v1345_v0 = vld [vmem:[%s1777_s1 + $0x4] ss:$8 sps:$4 sm:$0xff] (!%p190_p2)   ;;  %v1347_v1 = vld [vmem:[%s1777_s1] ss:$8 sps:$4 sm:$0xff] (!%p190_p2)   ;;  %v1348_v2 = vld [vmem:[%s1777_s1 + $0x14] ss:$8 sps:$4 sm:$0xff] (!%p190_p2)  }
   0x6   : > { %193 = sbr.rel (%p190_p2) target bundleno = 792 (0x318), region = 40  ;;  %520 = vmatprep.subr.bf16.mxu0 (!%p190_p2), %v1345_v0  ;;  %v1350_v3 = vld [vmem:[%s1777_s1 + $0x10] ss:$8 sps:$4 sm:$0xff] (!%p190_p2)   ;;  %v1351_v4 = vld [vmem:[%s1777_s1 + $0x24] ss:$8 sps:$4 sm:$0xff] (!%p190_p2)   ;;  %s1144_s30 = sshll.u32 (!%p190_p2), %s1139_s19, 4 }
   0x7   : > { %521 = vmatpush1.bf16.msra.mxu0 (!%p190_p2), %v1347_v1  ;;  %v1353_v5 = vld [vmem:[%s1777_s1 + $0x20] ss:$8 sps:$4 sm:$0xff] (!%p190_p2)   ;;  %v1354_v6 = vld [vmem:[%s1777_s1 + $0x34] ss:$8 sps:$4 sm:$0xff] (!%p190_p2)   ;;  %p219_p3 = scmp.lt.s32.totalorder (!%p190_p2), %s1144_s30, 31  ;;  %vm1066_vm0 = vcmask (!%p190_p2), 15360  }
   0x8   : > { %522 = vmatprep.subr.bf16.mxu0 (!%p190_p2), %v1348_v2  ;;  %v1356_v7 = vld [vmem:[%s1777_s1 + $0x30] ss:$8 sps:$4 sm:$0xff] (!%p190_p2)   ;;  %v1357_v8 = vld [vmem:[%s1777_s1 + $0x44] ss:$8 sps:$4 sm:$0xff] (!%p190_p2)   ;;  %v1359_v9 = vld [vmem:[%s1777_s1 + $0x40] ss:$8 sps:$4 sm:$0xff] (!%p190_p2)  }
   0x9   : > { %v1360_v10 = vld [vmem:[%s1777_s1 + $0x54] ss:$8 sps:$4 sm:$0xff] (!%p190_p2)   ;;  %v1362_v11 = vld [vmem:[%s1777_s1 + $0x50] ss:$8 sps:$4 sm:$0xff] (!%p190_p2)   ;;  %v1363_v12 = vld [vmem:[%s1777_s1 + $0x64] ss:$8 sps:$4 sm:$0xff] (!%p190_p2)  }
   0xa   : > { %v1365_v14 = vld [vmem:[%s1777_s1 + $0x60] ss:$8 sps:$4 sm:$0xff] (!%p190_p2)   ;;  %v1366_v15 = vld [vmem:[%s1777_s1 + $0x74] ss:$8 sps:$4 sm:$0xff] (!%p190_p2)   ;;  %v1368_v16 = vld [vmem:[%s1777_s1 + $0x70] ss:$8 sps:$4 sm:$0xff] (!%p190_p2)  }
   0xb   : > { %523 = vmatpush1.bf16.msra.mxu0 (!%p190_p2), %v1350_v3  ;;  %v1369_v17 = vld [vmem:[%s1777_s1 + $0x84] ss:$8 sps:$4 sm:$0xff] (!%p190_p2)   ;;  %v1371_v18 = vld [vmem:[%s1777_s1 + $0x80] ss:$8 sps:$4 sm:$0xff] (!%p190_p2)   ;;  %v1372_v19 = vld [vmem:[%s1777_s1 + $0x94] ss:$8 sps:$4 sm:$0xff] (!%p190_p2)  }
   0xc   : > { %524 = vmatprep.subr.bf16.mxu0 (!%p190_p2), %v1351_v4  ;;  %v1417_v20 = vld [vmem:[%s1778_s2 + $0x40] sm:$0xff] (!%p190_p2)   ;;  %v1374_v21 = vld [vmem:[%s1777_s1 + $0x90] ss:$8 sps:$4 sm:$0xff] (!%p190_p2)   ;;  %v1419_v24 = vld [vmem:[%s1778_s2 + $0x48] sm:$0xff] (!%p190_p2)  }
   0xd   : > { %s1783_s30 = smov (!%p219_p3, %s1144_s30), 31  ;;  %v1418_v22 = vld [vmem:[%s1778_s2] sm:$0xff]   ;;  %1225 = vmatprep.subr.bf16.mxu1 %v1417_v20  ;;  %v1420_v25 = vld [vmem:[%s1778_s2 + $0x8] sm:$0xff]   ;;  %v1421_v26 = vld [vmem:[%s1778_s2 + $0x50] sm:$0xff]  }
   0xe   : > { %s1224_s19 = sshll.u32 %s1783_s30, 3  ;;  %v1375_v23 = vld [vmem:[%s1777_s1 + $0xa4] ss:$8 sps:$4 sm:$0xff]   ;;  %1226 = vmatpush3.bf16.msra.mxu1 %v1418_v22  ;;  %v1377_v27 = vld [vmem:[%s1777_s1 + $0xa0] ss:$8 sps:$4 sm:$0xff]   ;;  %v1422_v29 = vld [vmem:[%s1778_s2 + $0x10] sm:$0xff]  }
   0xf   : > { %525 = vmatpush1.bf16.msra.mxu0 %v1353_v5  ;;  %s1563_s24 = scalar_lea.vmem %s1776_s0, %s1224_s19  ;;  %1227 = vmatprep.subr.bf16.mxu1 %v1419_v24  ;;  %v1378_v28 = vld [vmem:[%s1777_s1 + $0xb4] ss:$8 sps:$4 sm:$0xff]   ;;  %v1380_v31 = vld [vmem:[%s1777_s1 + $0xb0] ss:$8 sps:$4 sm:$0xff]   ;;  %v1381_v32 = vld [vmem:[%s1777_s1 + $0xc4] ss:$8 sps:$4 sm:$0xff]   ;;  %s1739_s8 = scalar_lea.vmem %s1781_s5, %s1224_s19 }
  0x10   : > { %526 = vmatprep.subr.bf16.mxu0 %v1354_v6  ;;  %v1395_v13 = vld [vmem:[%s1563_s24 + $0x4] ss:$8 sps:$4 sm:$0xff]   ;;  %v1423_v30 = vld [vmem:[%s1778_s2 + $0x58] sm:$0xff]   ;;  %v1383_v35 = vld [vmem:[%s1777_s1 + $0xc0] ss:$8 sps:$4 sm:$0xff]  }
  0x11   : > { %552 = vmatprep.mubr.bf16.mxu0 %v1395_v13  ;;  %v1424_v33 = vld [vmem:[%s1778_s2 + $0x18] sm:$0xff]   ;;  %v1425_v34 = vld [vmem:[%s1778_s2 + $0x60] sm:$0xff]   ;;  %v1427_v38 = vld [vmem:[%s1778_s2 + $0x68] sm:$0xff]  }
  0x12   : > { %1228 = vmatpush3.bf16.msra.mxu1 %v1420_v25  ;;  %v1426_v36 = vld [vmem:[%s1778_s2 + $0x20] sm:$0xff]   ;;  %v1384_v37 = vld [vmem:[%s1777_s1 + $0xd4] ss:$8 sps:$4 sm:$0xff]   ;;  %v1386_v39 = vld [vmem:[%s1777_s1 + $0xd0] ss:$8 sps:$4 sm:$0xff]  }
  0x13   : > { %527 = vmatpush1.bf16.msra.mxu0 %v1356_v7  ;;  %1229 = vmatprep.subr.bf16.mxu1 %v1421_v26  ;;  %v1428_v40 = vld [vmem:[%s1778_s2 + $0x28] sm:$0xff]   ;;  %v1429_v42 = vld [vmem:[%s1778_s2 + $0x70] sm:$0xff]   ;;  %v1431_v62 = vld [vmem:[%s1778_s2 + $0x78] sm:$0xff]  }
  0x14   : > { %528 = vmatprep.subr.bf16.mxu0 %v1357_v8  ;;  %v1387_v41 = vld [vmem:[%s1777_s1 + $0xe4] ss:$8 sps:$4 sm:$0xff]   ;;  %v1389_v43 = vld [vmem:[%s1777_s1 + $0xe0] ss:$8 sps:$4 sm:$0xff]   ;;  %v1390_v44 = vld [vmem:[%s1777_s1 + $0xf4] ss:$8 sps:$4 sm:$0xff]  }
  0x15   : > { %v1392_v45 = vld [vmem:[%s1777_s1 + $0xf0] ss:$8 sps:$4 sm:$0xff]   ;;  %v1393_v46 = vld [vmem:[%s1563_s24] ss:$8 sps:$4 sm:$0xff]   ;;  %v1396_v47 = vld [vmem:[%s1563_s24 + $0x14] ss:$8 sps:$4 sm:$0xff]  }
  0x16   : > { %1230 = vmatpush3.bf16.msra.mxu1 %v1422_v29  ;;  %v1398_v48 = vld [vmem:[%s1563_s24 + $0x10] ss:$8 sps:$4 sm:$0xff]   ;;  %v1399_v49 = vld [vmem:[%s1563_s24 + $0x24] ss:$8 sps:$4 sm:$0xff]   ;;  %v1401_v50 = vld [vmem:[%s1563_s24 + $0x20] ss:$8 sps:$4 sm:$0xff]  }
  0x17   : > { %529 = vmatpush1.bf16.msra.mxu0 %v1359_v9  ;;  %1231 = vmatprep.subr.bf16.mxu1 %v1423_v30  ;;  %v1402_v51 = vld [vmem:[%s1563_s24 + $0x34] ss:$8 sps:$4 sm:$0xff]   ;;  %v1404_v52 = vld [vmem:[%s1563_s24 + $0x30] ss:$8 sps:$4 sm:$0xff]   ;;  %v1405_v53 = vld [vmem:[%s1563_s24 + $0x44] ss:$8 sps:$4 sm:$0xff]  }
  0x18   : > { %530 = vmatprep.subr.bf16.mxu0 %v1360_v10  ;;  %v1407_v54 = vld [vmem:[%s1563_s24 + $0x40] ss:$8 sps:$4 sm:$0xff]   ;;  %v1408_v55 = vld [vmem:[%s1563_s24 + $0x54] ss:$8 sps:$4 sm:$0xff]   ;;  %v1410_v56 = vld [vmem:[%s1563_s24 + $0x50] ss:$8 sps:$4 sm:$0xff]  }
  0x19   : > { %v1411_v57 = vld [vmem:[%s1563_s24 + $0x64] ss:$8 sps:$4 sm:$0xff]   ;;  %v1413_v58 = vld [vmem:[%s1563_s24 + $0x60] ss:$8 sps:$4 sm:$0xff]   ;;  %v1414_v59 = vld [vmem:[%s1563_s24 + $0x74] ss:$8 sps:$4 sm:$0xff]  }
  0x1a   : > { %1232 = vmatpush3.bf16.msra.mxu1 %v1424_v33  ;;  %v1416_v60 = vld [vmem:[%s1563_s24 + $0x70] ss:$8 sps:$4 sm:$0xff]   ;;  %v1433_v0 = vld [vmem:[%s1780_s4] sm:$0xff]   ;;  %v1434_v7 = vld [vmem:[%s1780_s4 + $0x8] sm:$0xff]  }
  0x1b   : > { %531 = vmatpush1.bf16.msra.mxu0 %v1362_v11  ;;  %1233 = vmatprep.subr.bf16.mxu1 %v1425_v34  ;;  %v1430_v61 = vld [vmem:[%s1778_s2 + $0x30] sm:$0xff]   ;;  %v1432_v63 = vld [vmem:[%s1778_s2 + $0x38] sm:$0xff]  }
  0x1c   : > { %532 = vmatprep.subr.bf16.mxu0 %v1363_v12 }
  0x1e   : > { %1234 = vmatpush3.bf16.msra.mxu1 %v1426_v36 }
  0x1f   : > { %533 = vmatpush1.bf16.msra.mxu0 %v1365_v14  ;;  %1235 = vmatprep.subr.bf16.mxu1 %v1427_v38 }
  0x20   : > { %534 = vmatprep.subr.bf16.mxu0 %v1366_v15 }
  0x22   : > { %1236 = vmatpush3.bf16.msra.mxu1 %v1428_v40 }
  0x23   : > { %535 = vmatpush1.bf16.msra.mxu0 %v1368_v16  ;;  %1237 = vmatprep.subr.bf16.mxu1 %v1429_v42 }
  0x24   : > { %536 = vmatprep.subr.bf16.mxu0 %v1369_v17 }
  0x26   : > { %1238 = vmatpush3.bf16.msra.mxu1 %v1430_v61 }
  0x27   : > { %537 = vmatpush1.bf16.msra.mxu0 %v1371_v18  ;;  %1239 = vmatprep.subr.bf16.mxu1 %v1431_v62 }
  0x28   : > { %538 = vmatprep.subr.bf16.mxu0 %v1372_v19 }
  0x2a   : > { %1240 = vmatpush3.bf16.msra.mxu1 %v1432_v63 }
  0x2b   : > { %539 = vmatpush1.bf16.msra.mxu0 %v1374_v21  ;;  %1305 = vmatprep.subr.bf16.mxu1 %v1433_v0 }
  0x2c   : > { %540 = vmatprep.subr.bf16.mxu0 %v1375_v23 }
  0x2f   : > { %541 = vmatpush1.bf16.msra.mxu0 %v1377_v27 }
  0x30   : > { %542 = vmatprep.subr.bf16.mxu0 %v1378_v28 }
  0x33   : > { %543 = vmatpush1.bf16.msra.mxu0 %v1380_v31 }
  0x34   : > { %544 = vmatprep.subr.bf16.mxu0 %v1381_v32 }
  0x37   : > { %545 = vmatpush1.bf16.msra.mxu0 %v1383_v35 }
  0x38   : > { %546 = vmatprep.subr.bf16.mxu0 %v1384_v37 }
  0x3b   : > { %547 = vmatpush1.bf16.msra.mxu0 %v1386_v39 }
  0x3c   : > { %548 = vmatprep.subr.bf16.mxu0 %v1387_v41 }
  0x3f   : > { %549 = vmatpush1.bf16.msra.mxu0 %v1389_v43 }
  0x40   : > { %550 = vmatprep.subr.bf16.mxu0 %v1390_v44 }
  0x43   : > { %551 = vmatpush1.bf16.msra.mxu0 %v1392_v45 }
  0x46   : > { %553 = vmatmul.mubr.bf16.vlgmr.msra.gmra.mrb[0].mxu0 %v1393_v46 }
  0x47   : > { %562 = vmatprep.mubr.bf16.mxu0 %v1396_v47 }
  0x4e   : > { %563 = vmatmul.mubr.bf16.gmra.mrb[4].mxu0 %v1398_v48 }
  0x4f   : > { %572 = vmatprep.mubr.bf16.mxu0 %v1399_v49 }
  0x56   : > { %573 = vmatmul.mubr.bf16.gmra.mrb[8].mxu0 %v1401_v50  ;;  %v1435_v50 = vld [vmem:[%s1780_s4 + $0x10] sm:$0xff]  }
  0x57   : > { %582 = vmatprep.mubr.bf16.mxu0 %v1402_v51  ;;  %v1436_v51 = vld [vmem:[%s1780_s4 + $0x18] sm:$0xff]  }
  0x5e   : > { %583 = vmatmul.mubr.bf16.gmra.mrb[12].mxu0 %v1404_v52  ;;  %v1437_v52 = vld [vmem:[%s1780_s4 + $0x20] sm:$0xff]  }
  0x5f   : > { %592 = vmatprep.mubr.bf16.mxu0 %v1405_v53  ;;  %v1438_v53 = vld [vmem:[%s1780_s4 + $0x28] sm:$0xff]  }
  0x66   : > { %593 = vmatmul.mubr.bf16.gmra.mrb[16].mxu0 %v1407_v54  ;;  %v1439_v54 = vld [vmem:[%s1780_s4 + $0x30] sm:$0xff]  }
  0x67   : > { %602 = vmatprep.mubr.bf16.mxu0 %v1408_v55  ;;  %v1440_v55 = vld [vmem:[%s1780_s4 + $0x38] sm:$0xff]  }
  0x6e   : > { %603 = vmatmul.mubr.bf16.gmra.mrb[20].mxu0 %v1410_v56 }
  0x6f   : > { %612 = vmatprep.mubr.bf16.mxu0 %v1411_v57  ;;  %v1716_v57 = vld [vmem:[%s1779_s3] ss:$0 sm:$0xff] }
  0x76   : > { %613 = vmatmul.mubr.bf16.gmra.mrb[24].mxu0 %v1413_v58 }
  0x77   : > { %622 = vmatprep.mubr.bf16.mxu0 %v1414_v59 }
  0x7e   : > { %623 = vmatmul.mubr.bf16.gmra.mrb[28].mxu0 %v1416_v60 }
 0x119   : > { %v554_v1 = vpop.f32.mrb[0].mxu0 }
 0x11a   : > { %v556_v2 = vpop.f32.mrb[1].mxu0 }
 0x11b   : > { %v558_v3 = vpop.f32.mrb[2].mxu0 }
 0x11c   : > { %v633_v4 = vpack.c.bf16 %v558_v3, %v554_v1  ;;  %v560_v5 = vpop.f32.mrb[3].mxu0 }
 0x11d   : > { %v634_v6 = vpack.c.bf16 %v560_v5, %v556_v2 }
 0x11f   : > { %816 = vmatprep.mubr.bf16.mxu1 %v634_v6 }
 0x120   : > { %817 = vmatmul.mubr.bf16.vlgmr.msra.gmra.mrb[0].mxu1 %v633_v4 }
 0x121   : > { %v564_v8 = vpop.f32.mrb[4].mxu0  ;;  %1306 = vmatpush3.bf16.msra.mxu1 %v1433_v0 }
 0x122   : > { %v566_v9 = vpop.f32.mrb[5].mxu0  ;;  %1307 = vmatprep.subr.bf16.mxu1 %v1434_v7 }
 0x123   : > { %v568_v10 = vpop.f32.mrb[6].mxu0 }
 0x124   : > { %v635_v11 = vpack.c.bf16 %v568_v10, %v564_v8  ;;  %v570_v12 = vpop.f32.mrb[7].mxu0 }
 0x125   : > { %v636_v13 = vpack.c.bf16 %v570_v12, %v566_v9  ;;  %1308 = vmatpush3.bf16.msra.mxu1 %v1434_v7 }
 0x126   : > { %1309 = vmatprep.subr.bf16.mxu1 %v1435_v50 }
 0x127   : > { %824 = vmatprep.mubr.bf16.mxu1 %v636_v13 }
 0x128   : > { %825 = vmatmul.mubr.bf16.gmra.mrb[4].mxu1 %v635_v11 }
 0x129   : > { %v574_v14 = vpop.f32.mrb[8].mxu0  ;;  %1310 = vmatpush3.bf16.msra.mxu1 %v1435_v50 }
 0x12a   : > { %v576_v15 = vpop.f32.mrb[9].mxu0  ;;  %1311 = vmatprep.subr.bf16.mxu1 %v1436_v51 }
 0x12b   : > { %v578_v16 = vpop.f32.mrb[10].mxu0 }
 0x12c   : > { %v637_v17 = vpack.c.bf16 %v578_v16, %v574_v14  ;;  %v580_v18 = vpop.f32.mrb[11].mxu0 }
 0x12d   : > { %v638_v19 = vpack.c.bf16 %v580_v18, %v576_v15  ;;  %1312 = vmatpush3.bf16.msra.mxu1 %v1436_v51 }
 0x12e   : > { %1313 = vmatprep.subr.bf16.mxu1 %v1437_v52 }
 0x12f   : > { %832 = vmatprep.mubr.bf16.mxu1 %v638_v19 }
 0x130   : > { %833 = vmatmul.mubr.bf16.gmra.mrb[8].mxu1 %v637_v17 }
 0x131   : > { %v584_v20 = vpop.f32.mrb[12].mxu0  ;;  %1314 = vmatpush3.bf16.msra.mxu1 %v1437_v52 }
 0x132   : > { %v586_v21 = vpop.f32.mrb[13].mxu0  ;;  %1315 = vmatprep.subr.bf16.mxu1 %v1438_v53 }
 0x133   : > { %v588_v22 = vpop.f32.mrb[14].mxu0 }
 0x134   : > { %v639_v23 = vpack.c.bf16 %v588_v22, %v584_v20  ;;  %v590_v24 = vpop.f32.mrb[15].mxu0 }
 0x135   : > { %v640_v25 = vpack.c.bf16 %v590_v24, %v586_v21  ;;  %1316 = vmatpush3.bf16.msra.mxu1 %v1438_v53 }
 0x136   : > { %1317 = vmatprep.subr.bf16.mxu1 %v1439_v54 }
 0x137   : > { %840 = vmatprep.mubr.bf16.mxu1 %v640_v25 }
 0x138   : > { %841 = vmatmul.mubr.bf16.gmra.mrb[12].mxu1 %v639_v23 }
 0x139   : > { %v594_v26 = vpop.f32.mrb[16].mxu0  ;;  %1318 = vmatpush3.bf16.msra.mxu1 %v1439_v54 }
 0x13a   : > { %v596_v27 = vpop.f32.mrb[17].mxu0  ;;  %1319 = vmatprep.subr.bf16.mxu1 %v1440_v55 }
 0x13b   : > { %v598_v28 = vpop.f32.mrb[18].mxu0 }
 0x13c   : > { %v641_v29 = vpack.c.bf16 %v598_v28, %v594_v26  ;;  %v600_v30 = vpop.f32.mrb[19].mxu0 }
 0x13d   : > { %v642_v31 = vpack.c.bf16 %v600_v30, %v596_v27  ;;  %1320 = vmatpush3.bf16.msra.mxu1 %v1440_v55 }
 0x13f   : > { %848 = vmatprep.mubr.bf16.mxu1 %v642_v31 }
 0x140   : > { %849 = vmatmul.mubr.bf16.gmra.mrb[16].mxu1 %v641_v29 }
 0x141   : > { %v604_v32 = vpop.f32.mrb[20].mxu0 }
 0x142   : > { %v606_v33 = vpop.f32.mrb[21].mxu0 }
 0x143   : > { %v608_v34 = vpop.f32.mrb[22].mxu0 }
 0x144   : > { %v643_v35 = vpack.c.bf16 %v608_v34, %v604_v32  ;;  %v610_v36 = vpop.f32.mrb[23].mxu0 }
 0x145   : > { %v644_v37 = vpack.c.bf16 %v610_v36, %v606_v33 }
 0x147   : > { %856 = vmatprep.mubr.bf16.mxu1 %v644_v37 }
 0x148   : > { %857 = vmatmul.mubr.bf16.gmra.mrb[20].mxu1 %v643_v35 }
 0x149   : > { %v614_v38 = vpop.f32.mrb[24].mxu0 }
 0x14a   : > { %v616_v39 = vpop.f32.mrb[25].mxu0 }
 0x14b   : > { %v618_v40 = vpop.f32.mrb[26].mxu0 }
 0x14c   : > { %v645_v41 = vpack.c.bf16 %v618_v40, %v614_v38  ;;  %v620_v42 = vpop.f32.mrb[27].mxu0 }
 0x14d   : > { %v646_v43 = vpack.c.bf16 %v620_v42, %v616_v39 }
 0x14f   : > { %864 = vmatprep.mubr.bf16.mxu1 %v646_v43 }
 0x150   : > { %865 = vmatmul.mubr.bf16.gmra.mrb[24].mxu1 %v645_v41 }
 0x151   : > { %v624_v44 = vpop.f32.mrb[28].mxu0 }
 0x152   : > { %v626_v45 = vpop.f32.mrb[29].mxu0 }
 0x153   : > { %v628_v46 = vpop.f32.mrb[30].mxu0 }
 0x154   : > { %v647_v47 = vpack.c.bf16 %v628_v46, %v624_v44  ;;  %v630_v48 = vpop.f32.mrb[31].mxu0 }
 0x155   : > { %v648_v49 = vpack.c.bf16 %v630_v48, %v626_v45 }
 0x157   : > { %872 = vmatprep.mubr.bf16.mxu1 %v648_v49 }
 0x158   : > { %873 = vmatmul.mubr.bf16.gmra.mrb[28].mxu1 %v647_v47 }
 0x1f3   : > { %v1241_v56 = vpop.f32.mrb[0].mxu1 }
 0x1f4   : > { %v1242_v58 = vpop.f32.mrb[1].mxu1 }
 0x1f5   : > { %v1243_v59 = vadd.f32 %v1242_v58, %v1241_v56  ;;  %v1244_v60 = vpop.f32.mrb[2].mxu1 }
 0x1f6   : > { %v1245_v61 = vpop.f32.mrb[3].mxu1 }
 0x1f7   : > { %v819_v62 = vadd.f32 %v1243_v59, %v1716_v57  ;;  %v1246_v63 = vadd.f32 %v1245_v61, %v1244_v60 }
 0x1f9   : > { %v822_v0 = vadd.f32 %v1246_v63, %v1716_v57  ;;  %1441 = vtanh.f32 %v819_v62 }
 0x1fb   : > { %1443 = vtanh.f32 %v822_v0  ;;  %v1247_v1 = vpop.f32.mrb[4].mxu1 }
 0x1fc   : > { %v1248_v2 = vpop.f32.mrb[5].mxu1 }
 0x1fd   : > { %v1249_v3 = vadd.f32 %v1248_v2, %v1247_v1  ;;  %v1250_v4 = vpop.f32.mrb[6].mxu1 }
 0x1fe   : > { %v1251_v5 = vpop.f32.mrb[7].mxu1 }
 0x1ff   : > { %v827_v6 = vadd.f32 %v1249_v3, %v1716_v57  ;;  %v1252_v7 = vadd.f32 %v1251_v5, %v1250_v4 }
 0x201   : > { %v830_v8 = vadd.f32 %v1252_v7, %v1716_v57  ;;  %1445 = vtanh.f32 %v827_v6 }
 0x203   : > { %1447 = vtanh.f32 %v830_v8  ;;  %v1253_v9 = vpop.f32.mrb[8].mxu1  ;;  %v1442_v10 = vpop.eup %1441 }
 0x204   : > { %v1254_v11 = vpop.f32.mrb[9].mxu1 }
 0x205   : > { %v1444_v12 = vpop.eup %1443  ;;  %v1255_v13 = vadd.f32 %v1254_v11, %v1253_v9  ;;  %v1256_v14 = vpop.f32.mrb[10].mxu1 }
 0x206   : > { %v1257_v15 = vpop.f32.mrb[11].mxu1  ;;  %v897_v16 = vpack.c.bf16 %v1444_v12, %v1442_v10 }
 0x207   : > { %v835_v17 = vadd.f32 %v1255_v13, %v1716_v57  ;;  %v1258_v18 = vadd.f32 %v1257_v15, %v1256_v14 }
 0x208   : > { %1321 = vmatprep.mubr.bf16.mxu1 %v897_v16 }
 0x209   : > { %v838_v19 = vadd.f32 %v1258_v18, %v1716_v57  ;;  %1449 = vtanh.f32 %v835_v17 }
 0x20b   : > { %1451 = vtanh.f32 %v838_v19  ;;  %v1259_v20 = vpop.f32.mrb[12].mxu1  ;;  %v1446_v21 = vpop.eup %1445 }
 0x20c   : > { %v1260_v22 = vpop.f32.mrb[13].mxu1 }
 0x20d   : > { %v1448_v23 = vpop.eup %1447  ;;  %v1261_v24 = vadd.f32 %v1260_v22, %v1259_v20  ;;  %v1262_v25 = vpop.f32.mrb[14].mxu1 }
 0x20e   : > { %v1263_v26 = vpop.f32.mrb[15].mxu1  ;;  %v898_v27 = vpack.c.bf16 %v1448_v23, %v1446_v21 }
 0x20f   : > { %v843_v28 = vadd.f32 %v1261_v24, %v1716_v57  ;;  %v1264_v29 = vadd.f32 %v1263_v26, %v1262_v25 }
 0x210   : > { %1322 = vmatmul.mubr.bf16.vlgmr.msra.gmra.mrb[32].mxu1 %v898_v27 }
 0x211   : > { %v846_v30 = vadd.f32 %v1264_v29, %v1716_v57  ;;  %1453 = vtanh.f32 %v843_v28 }
 0x213   : > { %1455 = vtanh.f32 %v846_v30  ;;  %v1265_v31 = vpop.f32.mrb[16].mxu1  ;;  %v1450_v32 = vpop.eup %1449 }
 0x214   : > { %v1266_v33 = vpop.f32.mrb[17].mxu1 }
 0x215   : > { %v1452_v34 = vpop.eup %1451  ;;  %v1267_v35 = vadd.f32 %v1266_v33, %v1265_v31  ;;  %v1268_v36 = vpop.f32.mrb[18].mxu1 }
 0x216   : > { %v1269_v37 = vpop.f32.mrb[19].mxu1  ;;  %v899_v38 = vpack.c.bf16 %v1452_v34, %v1450_v32 }
 0x217   : > { %v851_v39 = vadd.f32 %v1267_v35, %v1716_v57  ;;  %v1270_v40 = vadd.f32 %v1269_v37, %v1268_v36 }
 0x218   : > { %1325 = vmatprep.mubr.bf16.mxu1 %v899_v38 }
 0x219   : > { %v854_v41 = vadd.f32 %v1270_v40, %v1716_v57  ;;  %1457 = vtanh.f32 %v851_v39 }
 0x21b   : > { %1459 = vtanh.f32 %v854_v41  ;;  %v1271_v42 = vpop.f32.mrb[20].mxu1  ;;  %v1454_v43 = vpop.eup %1453 }
 0x21c   : > { %v1272_v44 = vpop.f32.mrb[21].mxu1 }
 0x21d   : > { %v1456_v45 = vpop.eup %1455  ;;  %v1273_v46 = vadd.f32 %v1272_v44, %v1271_v42  ;;  %v1274_v47 = vpop.f32.mrb[22].mxu1 }
 0x21e   : > { %v1275_v48 = vpop.f32.mrb[23].mxu1  ;;  %v900_v49 = vpack.c.bf16 %v1456_v45, %v1454_v43 }
 0x21f   : > { %v859_v50 = vadd.f32 %v1273_v46, %v1716_v57  ;;  %v1276_v51 = vadd.f32 %v1275_v48, %v1274_v47 }
 0x220   : > { %1326 = vmatmul.mubr.bf16.gmra.mrb[36].mxu1 %v900_v49 }
 0x221   : > { %v862_v52 = vadd.f32 %v1276_v51, %v1716_v57  ;;  %1461 = vtanh.f32 %v859_v50 }
 0x223   : > { %1463 = vtanh.f32 %v862_v52  ;;  %v1277_v53 = vpop.f32.mrb[24].mxu1  ;;  %v1458_v54 = vpop.eup %1457 }
 0x224   : > { %v1278_v55 = vpop.f32.mrb[25].mxu1 }
 0x225   : > { %v1460_v56 = vpop.eup %1459  ;;  %v1279_v58 = vadd.f32 %v1278_v55, %v1277_v53  ;;  %v1280_v59 = vpop.f32.mrb[26].mxu1 }
 0x226   : > { %v1281_v60 = vpop.f32.mrb[27].mxu1  ;;  %v901_v61 = vpack.c.bf16 %v1460_v56, %v1458_v54 }
 0x227   : > { %v867_v62 = vadd.f32 %v1279_v58, %v1716_v57  ;;  %v1282_v63 = vadd.f32 %v1281_v60, %v1280_v59 }
 0x228   : > { %1329 = vmatprep.mubr.bf16.mxu1 %v901_v61 }
 0x229   : > { %v870_v0 = vadd.f32 %v1282_v63, %v1716_v57  ;;  %1465 = vtanh.f32 %v867_v62 }
 0x22b   : > { %1467 = vtanh.f32 %v870_v0  ;;  %v1283_v1 = vpop.f32.mrb[28].mxu1  ;;  %v1462_v2 = vpop.eup %1461 }
 0x22c   : > { %v1284_v3 = vpop.f32.mrb[29].mxu1 }
 0x22d   : > { %v1464_v4 = vpop.eup %1463  ;;  %v1285_v5 = vadd.f32 %v1284_v3, %v1283_v1  ;;  %v1286_v6 = vpop.f32.mrb[30].mxu1 }
 0x22e   : > { %v1287_v7 = vpop.f32.mrb[31].mxu1  ;;  %v902_v8 = vpack.c.bf16 %v1464_v4, %v1462_v2 }
 0x22f   : > { %v875_v9 = vadd.f32 %v1285_v5, %v1716_v57  ;;  %v1288_v10 = vadd.f32 %v1287_v7, %v1286_v6 }
 0x230   : > { %1330 = vmatmul.mubr.bf16.gmra.mrb[40].mxu1 %v902_v8 }
 0x231   : > { %v878_v11 = vadd.f32 %v1288_v10, %v1716_v57  ;;  %1469 = vtanh.f32 %v875_v9 }
 0x233   : > { %1471 = vtanh.f32 %v878_v11  ;;  %v1466_v12 = vpop.eup %1465 }
 0x235   : > { %v1468_v13 = vpop.eup %1467 }
 0x236   : > { %v903_v14 = vpack.c.bf16 %v1468_v13, %v1466_v12 }
 0x238   : > { %1333 = vmatprep.mubr.bf16.mxu1 %v903_v14 }
 0x23b   : > { %v1470_v15 = vpop.eup %1469 }
 0x23d   : > { %v1472_v16 = vpop.eup %1471 }
 0x23e   : > { %v904_v17 = vpack.c.bf16 %v1472_v16, %v1470_v15 }
 0x240   : > { %1334 = vmatmul.mubr.bf16.gmra.mrb[44].mxu1 %v904_v17 }
 0x2e3   : > { %v1323_v57 = vpop.f32.mrb[32].mxu1 }
 0x2e4   : > { %1069 = vst.msk [vmem:[%s1739_s8 + $0x10] sm:$0xff] %vm1066_vm0, %v1323_v57  ;;  %v1003_v18 = vpop.f32.mrb[33].mxu1 }
 0x2e5   : > { %1067 = vst.msk [vmem:[%s1739_s8] sm:$0xff] %vm1066_vm0, %v1003_v18  ;;  %v1324_v19 = vpop.f32.mrb[34].mxu1 }
 0x2e6   : > { %1070 = vst.msk [vmem:[%s1739_s8 + $0x18] sm:$0xff] %vm1066_vm0, %v1324_v19  ;;  %v1006_v20 = vpop.f32.mrb[35].mxu1 }
 0x2e7   : > { %1068 = vst.msk [vmem:[%s1739_s8 + $0x8] sm:$0xff] %vm1066_vm0, %v1006_v20 }
 0x2f3   : > { %v1327_v21 = vpop.f32.mrb[36].mxu1 }
 0x2f4   : > { %1073 = vst.msk [vmem:[%s1739_s8 + $0x30] sm:$0xff] %vm1066_vm0, %v1327_v21  ;;  %v1019_v22 = vpop.f32.mrb[37].mxu1 }
 0x2f5   : > { %1071 = vst.msk [vmem:[%s1739_s8 + $0x20] sm:$0xff] %vm1066_vm0, %v1019_v22  ;;  %v1328_v23 = vpop.f32.mrb[38].mxu1 }
 0x2f6   : > { %1074 = vst.msk [vmem:[%s1739_s8 + $0x38] sm:$0xff] %vm1066_vm0, %v1328_v23  ;;  %v1022_v24 = vpop.f32.mrb[39].mxu1 }
 0x2f7   : > { %1072 = vst.msk [vmem:[%s1739_s8 + $0x28] sm:$0xff] %vm1066_vm0, %v1022_v24 }
 0x303   : > { %v1331_v25 = vpop.f32.mrb[40].mxu1 }
 0x304   : > { %1077 = vst.msk [vmem:[%s1739_s8 + $0x50] sm:$0xff] %vm1066_vm0, %v1331_v25  ;;  %v1035_v26 = vpop.f32.mrb[41].mxu1 }
 0x305   : > { %1075 = vst.msk [vmem:[%s1739_s8 + $0x40] sm:$0xff] %vm1066_vm0, %v1035_v26  ;;  %v1332_v27 = vpop.f32.mrb[42].mxu1 }
 0x306   : > { %1078 = vst.msk [vmem:[%s1739_s8 + $0x58] sm:$0xff] %vm1066_vm0, %v1332_v27  ;;  %v1038_v28 = vpop.f32.mrb[43].mxu1 }
 0x307   : > { %1076 = vst.msk [vmem:[%s1739_s8 + $0x48] sm:$0xff] %vm1066_vm0, %v1038_v28 }
 0x313   : > { %v1335_v29 = vpop.f32.mrb[44].mxu1 }
 0x314   : > { %1081 = vst.msk [vmem:[%s1739_s8 + $0x70] sm:$0xff] %vm1066_vm0, %v1335_v29  ;;  %v1051_v30 = vpop.f32.mrb[45].mxu1 }
 0x315   : > { %1079 = vst.msk [vmem:[%s1739_s8 + $0x60] sm:$0xff] %vm1066_vm0, %v1051_v30  ;;  %v1336_v31 = vpop.f32.mrb[46].mxu1 }
 0x316   : > { %1082 = vst.msk [vmem:[%s1739_s8 + $0x78] sm:$0xff] %vm1066_vm0, %v1336_v31  ;;  %v1054_v32 = vpop.f32.mrb[47].mxu1 }
 0x317   : > { %1080 = vst.msk [vmem:[%s1739_s8 + $0x68] sm:$0xff] %vm1066_vm0, %v1054_v32 }
 0x318 PF: > { %s15_s18 = sadd.s32 1, %s1479_s18  }
 0x319   : > { %p12_p4 = scmp.ge.s32.totalorder %s15_s18, 4  }
 0x31b   :  { %14 = sbr.rel (!%p12_p4) target bundleno = 1 (0x1), region = 70 }

</bundles_post_ra>
